<compile_context>
chip_gen: v7x
topology: tpu7x:2x2x1
jax: 0.10.0
libtpu: 0.0.40
codegen_flags: <defaults>
</compile_context>

<pallas_src>
import jax
import jax.numpy as jnp
from jax.experimental import pallas as pl
from jax.experimental.pallas import tpu as pltpu


# ----------------------------- tile constants ------------------------------

TM = 256          # node row tile
TK = 512          # neighbor (contraction) tile -- widened per perf review
CH = 128          # lane-dense padded channel width
NUM_LAYERS = 3

assert TK % TM == 0


def _round_up(x, m):
    return ((x + m - 1) // m) * m


# ------------------------------ Pallas kernel -------------------------------

def _fused_gnn_kernel(a_ref, x_ref, pool_ref, invc_ref, w_ref, b_ref,
                      fw1_ref, fb1_ref, fw2_ref, fb2_ref,
                      o_ref,
                      acc_ref, pooled_ref, h_scr):
    l = pl.program_id(0)          # layer index
    i = pl.program_id(1)          # node row tile
    k = pl.program_id(2)          # neighbor / contraction tile
    nl = pl.num_programs(0)
    ni = pl.num_programs(1)
    nk = pl.num_programs(2)

    tm = acc_ref.shape[0]
    tk = a_ref.shape[1]
    n_pad = h_scr.shape[0] // 2   # ping-pong halves: [0, n_pad) / [n_pad, 2*n_pad)

    @pl.when((l == 0) & (i == 0) & (k == 0))
    def _init_pooled():
        pooled_ref[...] = jnp.zeros_like(pooled_ref)

    @pl.when(k == 0)
    def _init_acc():
        acc_ref[...] = jnp.zeros_like(acc_ref)

    # Aggregation-first: acc[i-tile] += A[i-tile, k-tile] @ H_prev[k-tile].
    # Two pl.when branches instead of a whole-tile jnp.where select: layer 0
    # reads the streamed padded input features; later layers read the
    # VMEM-resident ping-pong activation buffer.  bf16 operands, f32 MXU acc.
    @pl.when(l == 0)
    def _aggregate_from_x():
        acc_ref[...] += jnp.dot(a_ref[...], x_ref[...],
                                preferred_element_type=jnp.float32)

    @pl.when(l > 0)
    def _aggregate_from_vmem():
        src_off = pl.multiple_of((l % 2) * n_pad + k * tk, tk)
        acc_ref[...] += jnp.dot(a_ref[...], h_scr[pl.ds(src_off, tk), :],
                                preferred_element_type=jnp.float32)

    @pl.when(k == nk - 1)
    def _finalize_row_tile():
        # Feature transform: bf16 x bf16 on the MXU, f32 accumulation.
        # Bias + ReLU epilogue stays in f32 (v5e-friendly).
        h_new = jnp.dot(acc_ref[...].astype(jnp.bfloat16), w_ref[...],
                        preferred_element_type=jnp.float32)
        h_new = jnp.maximum(h_new + b_ref[...], 0.0)
        h_bf16 = h_new.astype(jnp.bfloat16)

        # The last layer's activations only feed pooling: skip the dead store.
        @pl.when(l < nl - 1)
        def _store_next_layer_input():
            dst_off = pl.multiple_of(((l + 1) % 2) * n_pad + i * tm, tm)
            h_scr[pl.ds(dst_off, tm), :] = h_bf16

        @pl.when(l == nl - 1)
        def _accumulate_pool():
            # 0/1 indicator (exact in bf16) x bf16 activations, f32 acc; the
            # 1/|V_g| normalization is applied once in the MLP head.
            pooled_ref[...] += jnp.dot(pool_ref[...], h_bf16,
                                       preferred_element_type=jnp.float32)

    @pl.when((l == nl - 1) & (i == ni - 1) & (k == nk - 1))
    def _mlp_head():
        pooled = pooled_ref[...] * invc_ref[...]            # mean pool, f32
        h1 = jnp.dot(pooled, fw1_ref[...],
                     preferred_element_type=jnp.float32) + fb1_ref[...]
        h1 = jnp.maximum(h1, 0.0)
        o_ref[...] = (jnp.dot(h1, fw2_ref[...],
                              preferred_element_type=jnp.float32)
                      + fb2_ref[...])


# ------------------------------- JAX wrapper ---------------------------------

@jax.jit
def gnn_forward(params, x, a_hat, pool_ind):
    n, in_ch = x.shape
    g = pool_ind.shape[0]
    out_ch = params["fw2"].shape[1]
    hid = params["fw1"].shape[1]

    n_pad = _round_up(max(n, TK), TK)            # multiple of TM and TK
    gp = _round_up(max(g, 8), 8)                 # sublane-friendly graph dim

    # ---- pad / cast inputs (bf16 feeds the MXU; accumulation stays f32) ----
    # Padded node rows produce relu(bias) in h, but A_hat / pool have zero
    # columns for padded nodes, so they never propagate (invariant preserved).
    x_p = jnp.zeros((n_pad, CH), jnp.bfloat16).at[:n, :in_ch].set(
        x.astype(jnp.bfloat16))
    a_p = jnp.zeros((n_pad, n_pad), jnp.bfloat16).at[:n, :n].set(
        a_hat.astype(jnp.bfloat16))
    # 0/1 pooling indicator (exact in bf16) + reciprocal node counts (f32).
    pool_p = jnp.zeros((gp, n_pad), jnp.bfloat16).at[:g, :n].set(
        pool_ind.astype(jnp.bfloat16))
    counts = jnp.maximum(jnp.sum(pool_ind, axis=1, keepdims=True), 1.0)
    invc_p = jnp.zeros((gp, 1), jnp.float32).at[:g].set(1.0 / counts)

    def pad2(w, r, c, dtype=jnp.float32):
        return jnp.zeros((r, c), dtype).at[:w.shape[0], :w.shape[1]].set(
            w.astype(dtype))

    # GCN weights in bf16 (single-pass MXU path); biases stay f32.
    w_stack = jnp.stack([pad2(params["w1"], CH, CH, jnp.bfloat16),
                         pad2(params["w2"], CH, CH, jnp.bfloat16),
                         pad2(params["w3"], CH, CH, jnp.bfloat16)])   # [3,128,128]
    b_stack = jnp.stack([pad2(params["b1"][None, :], 1, CH),
                         pad2(params["b2"][None, :], 1, CH),
                         pad2(params["b3"][None, :], 1, CH)])         # [3,1,128]
    fw1_p = pad2(params["fw1"], CH, hid)                              # [128,32] f32
    fb1_p = params["fb1"][None, :]                                    # [1,32]
    fw2_p = params["fw2"]                                             # [32,out]
    fb2_p = params["fb2"][None, :]                                    # [1,out]

    grid = (NUM_LAYERS, n_pad // TM, n_pad // TK)

    # ---- VMEM budget derived from actual buffer sizes (v7x has 64 MiB/TC) ----
    bf2, f4 = 2, 4
    scratch_bytes = (2 * n_pad * CH * bf2      # h_scr ping-pong activations
                     + TM * CH * f4            # acc
                     + gp * CH * f4)           # pooled graph sums
    dbuf_bytes = 2 * (TM * TK * bf2            # A tile (double buffered)
                      + TK * CH * bf2          # X tile
                      + gp * TM * bf2          # pool tile
                      + gp * 1 * f4            # inv counts
                      + CH * CH * bf2 + CH * f4            # W_l, b_l
                      + CH * hid * f4 + hid * f4           # fc1
                      + hid * out_ch * f4 + out_ch * f4)   # fc2
    need = scratch_bytes + dbuf_bytes + gp * out_ch * f4
    if need > 60 * 1024 * 1024:
        # TODO(synk): spill previous-layer activations to HBM for huge graphs.
        raise ValueError(f"graph too large for fused VMEM-resident kernel: {need} B")
    vmem_limit = min(max(2 * need, 32 * 1024 * 1024), 64 * 1024 * 1024)

    out = pl.pallas_call(
        _fused_gnn_kernel,
        out_shape=jax.ShapeDtypeStruct((gp, out_ch), jnp.float32),
        grid_spec=pltpu.PrefetchScalarGridSpec(
            num_scalar_prefetch=0,
            grid=grid,
            in_specs=[
                # A_hat: streamed per (i, k); re-streamed once per layer.
                pl.BlockSpec((TM, TK), lambda l, i, k: (i, k)),
                # X: only advanced during layer 0 (index pinned afterwards).
                pl.BlockSpec((TK, CH),
                             lambda l, i, k: (jnp.where(l == 0, k, 0), 0)),
                # pool indicator: only advanced during the last layer.
                pl.BlockSpec((gp, TM),
                             lambda l, i, k: (0, jnp.where(l == NUM_LAYERS - 1, i, 0))),
                pl.BlockSpec((gp, 1), lambda l, i, k: (0, 0)),            # 1/|V_g|
                pl.BlockSpec((None, CH, CH), lambda l, i, k: (l, 0, 0)),  # W_l (bf16)
                pl.BlockSpec((None, 1, CH), lambda l, i, k: (l, 0, 0)),   # b_l (f32)
                pl.BlockSpec((CH, hid), lambda l, i, k: (0, 0)),          # fc1 W
                pl.BlockSpec((1, hid), lambda l, i, k: (0, 0)),           # fc1 b
                pl.BlockSpec((hid, out_ch), lambda l, i, k: (0, 0)),      # fc2 W
                pl.BlockSpec((1, out_ch), lambda l, i, k: (0, 0)),        # fc2 b
            ],
            out_specs=pl.BlockSpec((gp, out_ch), lambda l, i, k: (0, 0)),
            scratch_shapes=[
                pltpu.VMEM((TM, CH), jnp.float32),          # per-row-tile acc
                pltpu.VMEM((gp, CH), jnp.float32),          # pooled graph sums
                pltpu.VMEM((2 * n_pad, CH), jnp.bfloat16),  # ping-pong activations
            ],
        ),
        compiler_params=pltpu.CompilerParams(
            # All axes carry VMEM-scratch dependencies (layer sequencing,
            # resident activations, k-reduction) -> sequential execution.
            dimension_semantics=("arbitrary", "arbitrary", "arbitrary"),
            vmem_limit_bytes=vmem_limit,
        ),
    )(a_p, x_p, pool_p, invc_p, w_stack, b_stack, fw1_p, fb1_p, fw2_p, fb2_p)

    return out[:g]


# ------------------------------ graph setup ----------------------------------

def build_norm_adj(edge_index, num_nodes):
    """Dense D^{-1/2}(A+I)D^{-1/2}, matching torch_geometric GCNConv defaults
    (edge weights scatter-added, self-loops, symmetric normalization)."""
    src, tgt = edge_index[0], edge_index[1]
    a = jnp.zeros((num_nodes, num_nodes), jnp.float32).at[tgt, src].add(1.0)
    a = a + jnp.eye(num_nodes, dtype=jnp.float32)
    deg = jnp.sum(a, axis=1)
    dinv = jax.lax.rsqrt(deg)
    return a * dinv[:, None] * dinv[None, :]


def build_pool_indicator(batch, num_graphs):
    """indicator[g, n] = 1.0 if batch[n] == g else 0.0 (mean applied later)."""
    return (batch[None, :] == jnp.arange(num_graphs)[:, None]).astype(jnp.float32)


def gnn_reference(params, x, a_hat, pool_ind):
    """Pure-JAX f32 reference of the PyTorch forward (for the tolerance test)."""
    h = x
    for wn, bn in (("w1", "b1"), ("w2", "b2"), ("w3", "b3")):
        h = jnp.maximum(a_hat @ h @ params[wn] + params[bn], 0.0)
    counts = jnp.maximum(jnp.sum(pool_ind, axis=1, keepdims=True), 1.0)
    g = (pool_ind @ h) / counts
    h1 = jnp.maximum(g @ params["fw1"] + params["fb1"], 0.0)
    return h1 @ params["fw2"] + params["fb2"]


def init_params(key, in_channels, out_channels):
    def glorot(key, fan_in, fan_out):
        lim = jnp.sqrt(6.0 / (fan_in + fan_out))
        return jax.random.uniform(key, (fan_in, fan_out), jnp.float32, -lim, lim)

    ks = jax.random.split(key, 8)
    return {
        # GCNConv: glorot weight, zero bias
        "w1": glorot(ks[0], in_channels, 128), "b1": jnp.zeros((128,), jnp.float32),
        "w2": glorot(ks[1], 128, 128),         "b2": jnp.zeros((128,), jnp.float32),
        "w3": glorot(ks[2], 128, 64),          "b3": jnp.zeros((64,), jnp.float32),
        # Linear layers (stored as [in, out])
        "fw1": glorot(ks[3], 64, 32),
        "fb1": jax.random.uniform(ks[4], (32,), jnp.float32, -0.1, 0.1),
        "fw2": glorot(ks[5], 32, out_channels),
        "fb2": jax.random.uniform(ks[6], (out_channels,), jnp.float32, -0.1, 0.1),
    }


# --------------------------------- demo --------------------------------------

if __name__ == "__main__":
    key = jax.random.PRNGKey(0)
    k_x, k_p = jax.random.split(key)

    IN_CHANNELS = 4
    OUT_CHANNELS = 8
    N_NODES = 16        # two graphs of 8 nodes each
    N_GRAPHS = 2

    # Deterministic node features.
    x = jax.random.normal(k_x, (N_NODES, IN_CHANNELS), jnp.float32)

    # Deterministic edge_index: a ring inside each graph, made undirected.
    src, tgt = [], []
    for gi in range(N_GRAPHS):
        base = gi * 8
        for ii in range(8):
            a_, b_ = base + ii, base + (ii + 1) % 8
            src += [a_, b_]
            tgt += [b_, a_]
    edge_index = jnp.array([src, tgt], dtype=jnp.int32)        # [2, E]
    batch = jnp.array([0] * 8 + [1] * 8, dtype=jnp.int32)      # [N]

    a_hat = build_norm_adj(edge_index, N_NODES)                 # [N, N]
    pool_ind = build_pool_indicator(batch, N_GRAPHS)            # [G, N] 0/1

    params = init_params(k_p, IN_CHANNELS, OUT_CHANNELS)

    out = gnn_forward(params, x, a_hat, pool_ind)
    jax.block_until_ready(out)
    assert out.shape == (N_GRAPHS, OUT_CHANNELS)

    # Tolerance test vs. the f32 reference (bf16 A_hat / activations / weights).
    ref = gnn_reference(params, x, a_hat, pool_ind)
    err = float(jnp.max(jnp.abs(out - ref)))
    assert err < 5e-2, f"kernel deviates from f32 reference: max abs err {err}"

    print("KERNEL_OK")
</pallas_src>

<mosaic_0001>
module attributes {stable_mosaic.version = 11 : i64} {
  func.func @_fused_gnn_kernel(%arg0: i32, %arg1: i32, %arg2: i32, %arg3: memref<256x512xbf16, #tpu.memory_space<vmem>>, %arg4: memref<512x128xbf16, #tpu.memory_space<vmem>>, %arg5: memref<8x256xbf16, #tpu.memory_space<vmem>>, %arg6: memref<8x1xf32, #tpu.memory_space<vmem>>, %arg7: memref<1x128x128xbf16, #tpu.memory_space<vmem>>, %arg8: memref<1x1x128xf32, #tpu.memory_space<vmem>>, %arg9: memref<128x32xf32, #tpu.memory_space<vmem>>, %arg10: memref<1x32xf32, #tpu.memory_space<vmem>>, %arg11: memref<32x8xf32, #tpu.memory_space<vmem>>, %arg12: memref<1x8xf32, #tpu.memory_space<vmem>>, %arg13: memref<8x8xf32, #tpu.memory_space<vmem>>, %arg14: memref<256x128xf32, #tpu.memory_space<vmem>>, %arg15: memref<8x128xf32, #tpu.memory_space<vmem>>, %arg16: memref<1024x128xbf16, #tpu.memory_space<vmem>>) attributes {dimension_semantics = [#tpu.dimension_semantics<arbitrary>, #tpu.dimension_semantics<arbitrary>, #tpu.dimension_semantics<arbitrary>], iteration_bounds = array<i64: 3, 2, 1>, scalar_prefetch = 0 : i64, scratch_operands = 3 : i64, tpu.core_type = #tpu.core_type<tc>, window_params = [{transform_indices = @transform_0, window_bounds = array<i64: 256, 512>}, {transform_indices = @transform_1, window_bounds = array<i64: 512, 128>}, {transform_indices = @transform_2, window_bounds = array<i64: 8, 256>}, {pipeline_mode = #tpu.pipeline_mode<synchronous>, transform_indices = @transform_3, window_bounds = array<i64: 8, 1>}, {transform_indices = @transform_4, window_bounds = array<i64: 1, 128, 128>}, {transform_indices = @transform_5, window_bounds = array<i64: 1, 1, 128>}, {pipeline_mode = #tpu.pipeline_mode<synchronous>, transform_indices = @transform_6, window_bounds = array<i64: 128, 32>}, {pipeline_mode = #tpu.pipeline_mode<synchronous>, transform_indices = @transform_7, window_bounds = array<i64: 1, 32>}, {pipeline_mode = #tpu.pipeline_mode<synchronous>, transform_indices = @transform_8, window_bounds = array<i64: 32, 8>}, {pipeline_mode = #tpu.pipeline_mode<synchronous>, transform_indices = @transform_9, window_bounds = array<i64: 1, 8>}, {pipeline_mode = #tpu.pipeline_mode<synchronous>, transform_indices = @transform_10, window_bounds = array<i64: 8, 8>}]} {
    %c0_i32 = arith.constant 0 : i32
    %0 = arith.cmpi eq, %arg0, %c0_i32 : i32
    %c0_i32_0 = arith.constant 0 : i32
    %1 = arith.cmpi eq, %arg1, %c0_i32_0 : i32
    %2 = arith.andi %0, %1 : i1
    %c0_i32_1 = arith.constant 0 : i32
    %3 = arith.cmpi eq, %arg2, %c0_i32_1 : i32
    %4 = arith.andi %2, %3 : i1
    %5 = arith.extui %4 : i1 to i32
    %c0_i32_2 = arith.constant 0 : i32
    %6 = arith.cmpi ne, %5, %c0_i32_2 : i32
    scf.if %6 {
      %cst = arith.constant 0.000000e+00 : f32
      %26 = vector.broadcast %cst : f32 to vector<8x128xf32>
      %c0 = arith.constant 0 : index
      %c0_13 = arith.constant 0 : index
      %27 = vector.load %arg15[%c0, %c0_13] : memref<8x128xf32, #tpu.memory_space<vmem>>, vector<8x128xf32>
      tpu.vector_store %arg15[%c0, %c0_13], %26 {strides = array<i32>} : memref<8x128xf32, #tpu.memory_space<vmem>>, vector<8x128xf32>,
    } else {
    }
    %c0_i32_3 = arith.constant 0 : i32
    %7 = arith.cmpi eq, %arg2, %c0_i32_3 : i32
    %8 = arith.extui %7 : i1 to i32
    %c0_i32_4 = arith.constant 0 : i32
    %9 = arith.cmpi ne, %8, %c0_i32_4 : i32
    scf.if %9 {
      %cst = arith.constant 0.000000e+00 : f32
      %26 = vector.broadcast %cst : f32 to vector<256x128xf32>
      %c0 = arith.constant 0 : index
      %c0_13 = arith.constant 0 : index
      %27 = vector.load %arg14[%c0, %c0_13] : memref<256x128xf32, #tpu.memory_space<vmem>>, vector<256x128xf32>
      tpu.vector_store %arg14[%c0, %c0_13], %26 {strides = array<i32>} : memref<256x128xf32, #tpu.memory_space<vmem>>, vector<256x128xf32>,
    } else {
    }
    %c0_i32_5 = arith.constant 0 : i32
    %10 = arith.cmpi eq, %arg0, %c0_i32_5 : i32
    %11 = arith.extui %10 : i1 to i32
    %c0_i32_6 = arith.constant 0 : i32
    %12 = arith.cmpi ne, %11, %c0_i32_6 : i32
    scf.if %12 {
      %c0 = arith.constant 0 : index
      %c0_13 = arith.constant 0 : index
      %26 = vector.load %arg14[%c0, %c0_13] : memref<256x128xf32, #tpu.memory_space<vmem>>, vector<256x128xf32>
      %c0_14 = arith.constant 0 : index
      %c0_15 = arith.constant 0 : index
      %27 = vector.load %arg3[%c0_14, %c0_15] : memref<256x512xbf16, #tpu.memory_space<vmem>>, vector<256x512xbf16>
      %c0_16 = arith.constant 0 : index
      %c0_17 = arith.constant 0 : index
      %28 = vector.load %arg4[%c0_16, %c0_17] : memref<512x128xbf16, #tpu.memory_space<vmem>>, vector<512x128xbf16>
      %cst = arith.constant dense<0.000000e+00> : vector<256x128xf32>
      %29 = tpu.matmul %27, %28, %cst {dimension_numbers = #tpu.dot_dimension_numbers<[1], [0], [0], [1], [0, 0, 1, 1], [], []>} : vector<256x512xbf16>, vector<512x128xbf16>, vector<256x128xf32> -> vector<256x128xf32>
      %30 = arith.addf %26, %29 : vector<256x128xf32>
      %c0_18 = arith.constant 0 : index
      %c0_19 = arith.constant 0 : index
      %31 = vector.load %arg14[%c0_18, %c0_19] : memref<256x128xf32, #tpu.memory_space<vmem>>, vector<256x128xf32>
      tpu.vector_store %arg14[%c0_18, %c0_19], %30 {strides = array<i32>} : memref<256x128xf32, #tpu.memory_space<vmem>>, vector<256x128xf32>,
    } else {
    }
    %c0_i32_7 = arith.constant 0 : i32
    %13 = arith.cmpi sgt, %arg0, %c0_i32_7 : i32
    %14 = arith.extui %13 : i1 to i32
    %c0_i32_8 = arith.constant 0 : i32
    %15 = arith.cmpi ne, %14, %c0_i32_8 : i32
    scf.if %15 {
      %c2_i32_13 = arith.constant 2 : i32
      %c0_i32_14 = arith.constant 0 : i32
      %26 = arith.cmpi eq, %c2_i32_13, %c0_i32_14 : i32
      %c1_i32_15 = arith.constant 1 : i32
      %27 = arith.select %26, %c1_i32_15, %c2_i32_13 : i32
      %28 = arith.remsi %arg0, %27 : i32
      %c0_i32_16 = arith.constant 0 : i32
      %29 = arith.cmpi ne, %28, %c0_i32_16 : i32
      %c0_i32_17 = arith.constant 0 : i32
      %30 = arith.cmpi slt, %28, %c0_i32_17 : i32
      %c0_i32_18 = arith.constant 0 : i32
      %31 = arith.cmpi slt, %27, %c0_i32_18 : i32
      %32 = arith.xori %30, %31 : i1
      %33 = arith.andi %32, %29 : i1
      %34 = arith.addi %28, %27 : i32
      %35 = arith.select %33, %34, %28 : i32
      %c512_i32 = arith.constant 512 : i32
      %36 = arith.muli %35, %c512_i32 : i32
      %c512_i32_19 = arith.constant 512 : i32
      %37 = arith.muli %arg2, %c512_i32_19 : i32
      %38 = arith.addi %36, %37 : i32
      %39 = tpu.assume_multiple %38, 512 : i32
      %c0 = arith.constant 0 : index
      %c0_20 = arith.constant 0 : index
      %40 = vector.load %arg14[%c0, %c0_20] : memref<256x128xf32, #tpu.memory_space<vmem>>, vector<256x128xf32>
      %c0_21 = arith.constant 0 : index
      %c0_22 = arith.constant 0 : index
      %41 = vector.load %arg3[%c0_21, %c0_22] : memref<256x512xbf16, #tpu.memory_space<vmem>>, vector<256x512xbf16>
      %42 = arith.index_cast %39 : i32 to index
      %c0_23 = arith.constant 0 : index
      %43 = vector.load %arg16[%42, %c0_23] : memref<1024x128xbf16, #tpu.memory_space<vmem>>, vector<512x128xbf16>
      %cst = arith.constant dense<0.000000e+00> : vector<256x128xf32>
      %44 = tpu.matmul %41, %43, %cst {dimension_numbers = #tpu.dot_dimension_numbers<[1], [0], [0], [1], [0, 0, 1, 1], [], []>} : vector<256x512xbf16>, vector<512x128xbf16>, vector<256x128xf32> -> vector<256x128xf32>
      %45 = arith.addf %40, %44 : vector<256x128xf32>
      %c0_24 = arith.constant 0 : index
      %c0_25 = arith.constant 0 : index
      %46 = vector.load %arg14[%c0_24, %c0_25] : memref<256x128xf32, #tpu.memory_space<vmem>>, vector<256x128xf32>
      tpu.vector_store %arg14[%c0_24, %c0_25], %45 {strides = array<i32>} : memref<256x128xf32, #tpu.memory_space<vmem>>, vector<256x128xf32>,
    } else {
    }
    %c0_i32_9 = arith.constant 0 : i32
    %16 = arith.cmpi eq, %arg2, %c0_i32_9 : i32
    %17 = arith.extui %16 : i1 to i32
    %c0_i32_10 = arith.constant 0 : i32
    %18 = arith.cmpi ne, %17, %c0_i32_10 : i32
    scf.if %18 {
      %c0 = arith.constant 0 : index
      %c0_13 = arith.constant 0 : index
      %26 = vector.load %arg14[%c0, %c0_13] : memref<256x128xf32, #tpu.memory_space<vmem>>, vector<256x128xf32>
      %27 = arith.truncf %26 : vector<256x128xf32> to vector<256x128xbf16>
      %c0_14 = arith.constant 0 : index
      %c0_15 = arith.constant 0 : index
      %c0_16 = arith.constant 0 : index
      %28 = vector.load %arg7[%c0_14, %c0_15, %c0_16] : memref<1x128x128xbf16, #tpu.memory_space<vmem>>, vector<1x128x128xbf16>
      %29 = vector.shape_cast %28 : vector<1x128x128xbf16> to vector<128x128xbf16>
      %cst = arith.constant dense<0.000000e+00> : vector<256x128xf32>
      %30 = tpu.matmul %27, %29, %cst {dimension_numbers = #tpu.dot_dimension_numbers<[1], [0], [0], [1], [0, 0, 1, 1], [], []>} : vector<256x128xbf16>, vector<128x128xbf16>, vector<256x128xf32> -> vector<256x128xf32>
      %c0_17 = arith.constant 0 : index
      %c0_18 = arith.constant 0 : index
      %c0_19 = arith.constant 0 : index
      %31 = vector.load %arg8[%c0_17, %c0_18, %c0_19] : memref<1x1x128xf32, #tpu.memory_space<vmem>>, vector<1x1x128xf32>
      %32 = vector.shape_cast %31 : vector<1x1x128xf32> to vector<1x128xf32>
      %33 = vector.broadcast %32 : vector<1x128xf32> to vector<256x128xf32>
      %34 = arith.addf %30, %33 : vector<256x128xf32>
      %cst_20 = arith.constant 0.000000e+00 : f32
      %35 = vector.broadcast %cst_20 : f32 to vector<256x128xf32>
      %36 = arith.maximumf %34, %35 : vector<256x128xf32>
      %37 = arith.truncf %36 : vector<256x128xf32> to vector<256x128xbf16>
      %c2_i32_21 = arith.constant 2 : i32
      %38 = arith.cmpi slt, %arg0, %c2_i32_21 : i32
      %39 = arith.extui %38 : i1 to i32
      %c0_i32_22 = arith.constant 0 : i32
      %40 = arith.cmpi ne, %39, %c0_i32_22 : i32
      scf.if %40 {
        %c1_i32_25 = arith.constant 1 : i32
        %44 = arith.addi %arg0, %c1_i32_25 : i32
        %c2_i32_26 = arith.constant 2 : i32
        %c0_i32_27 = arith.constant 0 : i32
        %45 = arith.cmpi eq, %c2_i32_26, %c0_i32_27 : i32
        %c1_i32_28 = arith.constant 1 : i32
        %46 = arith.select %45, %c1_i32_28, %c2_i32_26 : i32
        %47 = arith.remsi %44, %46 : i32
        %c0_i32_29 = arith.constant 0 : i32
        %48 = arith.cmpi ne, %47, %c0_i32_29 : i32
        %c0_i32_30 = arith.constant 0 : i32
        %49 = arith.cmpi slt, %47, %c0_i32_30 : i32
        %c0_i32_31 = arith.constant 0 : i32
        %50 = arith.cmpi slt, %46, %c0_i32_31 : i32
        %51 = arith.xori %49, %50 : i1
        %52 = arith.andi %51, %48 : i1
        %53 = arith.addi %47, %46 : i32
        %54 = arith.select %52, %53, %47 : i32
        %c512_i32 = arith.constant 512 : i32
        %55 = arith.muli %54, %c512_i32 : i32
        %c256_i32 = arith.constant 256 : i32
        %56 = arith.muli %arg1, %c256_i32 : i32
        %57 = arith.addi %55, %56 : i32
        %58 = tpu.assume_multiple %57, 256 : i32
        %59 = arith.index_cast %58 : i32 to index
        %c0_32 = arith.constant 0 : index
        %60 = vector.load %arg16[%59, %c0_32] : memref<1024x128xbf16, #tpu.memory_space<vmem>>, vector<256x128xbf16>
        tpu.vector_store %arg16[%59, %c0_32], %37 {strides = array<i32>} : memref<1024x128xbf16, #tpu.memory_space<vmem>>, vector<256x128xbf16>,
      } else {
      }
      %c2_i32_23 = arith.constant 2 : i32
      %41 = arith.cmpi eq, %arg0, %c2_i32_23 : i32
      %42 = arith.extui %41 : i1 to i32
      %c0_i32_24 = arith.constant 0 : i32
      %43 = arith.cmpi ne, %42, %c0_i32_24 : i32
      scf.if %43 {
        %c0_25 = arith.constant 0 : index
        %c0_26 = arith.constant 0 : index
        %44 = vector.load %arg15[%c0_25, %c0_26] : memref<8x128xf32, #tpu.memory_space<vmem>>, vector<8x128xf32>
        %c0_27 = arith.constant 0 : index
        %c0_28 = arith.constant 0 : index
        %45 = vector.load %arg5[%c0_27, %c0_28] : memref<8x256xbf16, #tpu.memory_space<vmem>>, vector<8x256xbf16>
        %cst_29 = arith.constant dense<0.000000e+00> : vector<8x128xf32>
        %46 = tpu.matmul %45, %37, %cst_29 {dimension_numbers = #tpu.dot_dimension_numbers<[1], [0], [0], [1], [0, 0, 1, 1], [], []>} : vector<8x256xbf16>, vector<256x128xbf16>, vector<8x128xf32> -> vector<8x128xf32>
        %47 = arith.addf %44, %46 : vector<8x128xf32>
        %c0_30 = arith.constant 0 : index
        %c0_31 = arith.constant 0 : index
        %48 = vector.load %arg15[%c0_30, %c0_31] : memref<8x128xf32, #tpu.memory_space<vmem>>, vector<8x128xf32>
        tpu.vector_store %arg15[%c0_30, %c0_31], %47 {strides = array<i32>} : memref<8x128xf32, #tpu.memory_space<vmem>>, vector<8x128xf32>,
      } else {
      }
    } else {
    }
    %c2_i32 = arith.constant 2 : i32
    %19 = arith.cmpi eq, %arg0, %c2_i32 : i32
    %c1_i32 = arith.constant 1 : i32
    %20 = arith.cmpi eq, %arg1, %c1_i32 : i32
    %21 = arith.andi %19, %20 : i1
    %c0_i32_11 = arith.constant 0 : i32
    %22 = arith.cmpi eq, %arg2, %c0_i32_11 : i32
    %23 = arith.andi %21, %22 : i1
    %24 = arith.extui %23 : i1 to i32
    %c0_i32_12 = arith.constant 0 : i32
    %25 = arith.cmpi ne, %24, %c0_i32_12 : i32
    scf.if %25 {
      %c0 = arith.constant 0 : index
      %c0_13 = arith.constant 0 : index
      %26 = vector.load %arg15[%c0, %c0_13] : memref<8x128xf32, #tpu.memory_space<vmem>>, vector<8x128xf32>
      %c0_14 = arith.constant 0 : index
      %c0_15 = arith.constant 0 : index
      %27 = vector.load %arg6[%c0_14, %c0_15] : memref<8x1xf32, #tpu.memory_space<vmem>>, vector<8x1xf32>
      %28 = vector.broadcast %27 : vector<8x1xf32> to vector<8x128xf32>
      %29 = arith.mulf %26, %28 : vector<8x128xf32>
      %c0_16 = arith.constant 0 : index
      %c0_17 = arith.constant 0 : index
      %30 = vector.load %arg9[%c0_16, %c0_17] : memref<128x32xf32, #tpu.memory_space<vmem>>, vector<128x32xf32>
      %cst = arith.constant dense<0.000000e+00> : vector<8x32xf32>
      %31 = tpu.matmul %29, %30, %cst {dimension_numbers = #tpu.dot_dimension_numbers<[1], [0], [0], [1], [0, 0, 1, 1], [], []>} : vector<8x128xf32>, vector<128x32xf32>, vector<8x32xf32> -> vector<8x32xf32>
      %c0_18 = arith.constant 0 : index
      %c0_19 = arith.constant 0 : index
      %32 = vector.load %arg10[%c0_18, %c0_19] : memref<1x32xf32, #tpu.memory_space<vmem>>, vector<1x32xf32>
      %33 = vector.broadcast %32 : vector<1x32xf32> to vector<8x32xf32>
      %34 = arith.addf %31, %33 : vector<8x32xf32>
      %cst_20 = arith.constant 0.000000e+00 : f32
      %35 = vector.broadcast %cst_20 : f32 to vector<8x32xf32>
      %36 = arith.maximumf %34, %35 : vector<8x32xf32>
      %c0_21 = arith.constant 0 : index
      %c0_22 = arith.constant 0 : index
      %37 = vector.load %arg11[%c0_21, %c0_22] : memref<32x8xf32, #tpu.memory_space<vmem>>, vector<32x8xf32>
      %cst_23 = arith.constant dense<0.000000e+00> : vector<8x8xf32>
      %38 = tpu.matmul %36, %37, %cst_23 {dimension_numbers = #tpu.dot_dimension_numbers<[1], [0], [0], [1], [0, 0, 1, 1], [], []>} : vector<8x32xf32>, vector<32x8xf32>, vector<8x8xf32> -> vector<8x8xf32>
      %c0_24 = arith.constant 0 : index
      %c0_25 = arith.constant 0 : index
      %39 = vector.load %arg12[%c0_24, %c0_25] : memref<1x8xf32, #tpu.memory_space<vmem>>, vector<1x8xf32>
      %40 = vector.broadcast %39 : vector<1x8xf32> to vector<8x8xf32>
      %41 = arith.addf %38, %40 : vector<8x8xf32>
      %c0_26 = arith.constant 0 : index
      %c0_27 = arith.constant 0 : index
      %42 = vector.load %arg13[%c0_26, %c0_27] : memref<8x8xf32, #tpu.memory_space<vmem>>, vector<8x8xf32>
      tpu.vector_store %arg13[%c0_26, %c0_27], %41 {strides = array<i32>} : memref<8x8xf32, #tpu.memory_space<vmem>>, vector<8x8xf32>,
    } else {
    }
    return
  }
  func.func @transform_0(%arg0: i32, %arg1: i32, %arg2: i32) -> (i32, i32) {
    %c0_i32 = arith.constant 0 : i32
    return %arg1, %arg2 : i32, i32
  }
  func.func @transform_1(%arg0: i32, %arg1: i32, %arg2: i32) -> (i32, i32) {
    %c0_i32 = arith.constant 0 : i32
    %0 = arith.cmpi eq, %arg0, %c0_i32 : i32
    %c0_i32_0 = arith.constant 0 : i32
    %1 = arith.select %0, %arg2, %c0_i32_0 : i32
    %c0_i32_1 = arith.constant 0 : i32
    %c0_i32_2 = arith.constant 0 : i32
    return %1, %c0_i32_1 : i32, i32
  }
  func.func @transform_2(%arg0: i32, %arg1: i32, %arg2: i32) -> (i32, i32) {
    %c2_i32 = arith.constant 2 : i32
    %0 = arith.cmpi eq, %arg0, %c2_i32 : i32
    %c0_i32 = arith.constant 0 : i32
    %1 = arith.select %0, %arg1, %c0_i32 : i32
    %c0_i32_0 = arith.constant 0 : i32
    %c0_i32_1 = arith.constant 0 : i32
    return %c0_i32_0, %1 : i32, i32
  }
  func.func @transform_3(%arg0: i32, %arg1: i32, %arg2: i32) -> (i32, i32) {
    %c0_i32 = arith.constant 0 : i32
    %c0_i32_0 = arith.constant 0 : i32
    %c0_i32_1 = arith.constant 0 : i32
    return %c0_i32, %c0_i32_0 : i32, i32
  }
  func.func @transform_4(%arg0: i32, %arg1: i32, %arg2: i32) -> (i32, i32, i32) {
    %c0_i32 = arith.constant 0 : i32
    %c0_i32_0 = arith.constant 0 : i32
    %c0_i32_1 = arith.constant 0 : i32
    return %arg0, %c0_i32, %c0_i32_0 : i32, i32, i32
  }
  func.func @transform_5(%arg0: i32, %arg1: i32, %arg2: i32) -> (i32, i32, i32) {
    %c0_i32 = arith.constant 0 : i32
    %c0_i32_0 = arith.constant 0 : i32
    %c0_i32_1 = arith.constant 0 : i32
    return %arg0, %c0_i32, %c0_i32_0 : i32, i32, i32
  }
  func.func @transform_6(%arg0: i32, %arg1: i32, %arg2: i32) -> (i32, i32) {
    %c0_i32 = arith.constant 0 : i32
    %c0_i32_0 = arith.constant 0 : i32
    %c0_i32_1 = arith.constant 0 : i32
    return %c0_i32, %c0_i32_0 : i32, i32
  }
  func.func @transform_7(%arg0: i32, %arg1: i32, %arg2: i32) -> (i32, i32) {
    %c0_i32 = arith.constant 0 : i32
    %c0_i32_0 = arith.constant 0 : i32
    %c0_i32_1 = arith.constant 0 : i32
    return %c0_i32, %c0_i32_0 : i32, i32
  }
  func.func @transform_8(%arg0: i32, %arg1: i32, %arg2: i32) -> (i32, i32) {
    %c0_i32 = arith.constant 0 : i32
    %c0_i32_0 = arith.constant 0 : i32
    %c0_i32_1 = arith.constant 0 : i32
    return %c0_i32, %c0_i32_0 : i32, i32
  }
  func.func @transform_9(%arg0: i32, %arg1: i32, %arg2: i32) -> (i32, i32) {
    %c0_i32 = arith.constant 0 : i32
    %c0_i32_0 = arith.constant 0 : i32
    %c0_i32_1 = arith.constant 0 : i32
    return %c0_i32, %c0_i32_0 : i32, i32
  }
  func.func @transform_10(%arg0: i32, %arg1: i32, %arg2: i32) -> (i32, i32) {
    %c0_i32 = arith.constant 0 : i32
    %c0_i32_0 = arith.constant 0 : i32
    %c0_i32_1 = arith.constant 0 : i32
    return %c0_i32, %c0_i32_0 : i32, i32
  }
}

</mosaic_0001>

<bundles_post_ra>
// kernel: gnn_forward.1
= control target key start
LH: loop header
LB: loop body
LE: loop exit
PB: predicated region body
PF: predicated region fallthrough
CT: control target
= control target key end

     0   :  { %s4420_s13 = smov 0   ;;  %s4422_s14 = smov 0   ;;  %s4938_s0 = inlined_call_operand.vmem [shape: bf16[512,512], index: 0, kind: input, shape index: {}]   ;;  %s4939_s1 = inlined_call_operand.vmem [shape: bf16[512,128], index: 1, kind: input, shape index: {}]   ;;  %s4940_s2 = inlined_call_operand.vmem [shape: bf16[8,512], index: 2, kind: input, shape index: {}]   ;;  %s4941_s3 = inlined_call_operand.vmem [shape: f32[8,1], index: 3, kind: input, shape index: {}]   ;;  %s4942_s4 = inlined_call_operand.vmem [shape: bf16[3,128,128], index: 4, kind: input, shape index: {}]   ;;  %s4943_s5 = inlined_call_operand.vmem [shape: f32[3,1,128], index: 5, kind: input, shape index: {}]   ;;  %s4944_s6 = inlined_call_operand.vmem [shape: f32[128,32], index: 6, kind: input, shape index: {}]   ;;  %s4945_s7 = inlined_call_operand.vmem [shape: f32[1,32], index: 7, kind: input, shape index: {}]   ;;  %s4946_s8 = inlined_call_operand.vmem [shape: f32[32,8], index: 8, kind: input, shape index: {}]   ;;  %s4947_s9 = inlined_call_operand.vmem [shape: f32[1,8], index: 9, kind: input, shape index: {}]   ;;  %s4948_s10 = inlined_call_operand.vmem [shape: f32[8,8], index: 10, kind: output, shape index: {}]  }
   0x1   :  { %4949 = sst [smem:[#allocation5_spill]] %s4938_s0  ;;  %s4424_s15 = smov 0  }
   0x2   :  { %s4426_s16 = smov 0   ;;  %s4428_s17 = smov 0  }
   0x3 LB: > { %s35_s18 = sadd.s32 1, %s4349_s15  ;;  %s39_s19 = sadd.s32 1, %s4353_s16  ;;  %s4357_s17 = sphi %s4428_s17, %s20_s17   ;;  %s4353_s16 = sphi %s4426_s16, %s4955_s16   ;;  %s4349_s15 = sphi %s4424_s15, %s4954_s15   ;;  %s4345_s14 = sphi %s4422_s14, %s4953_s14   ;;  %s4341_s13 = sphi %s4420_s13, %s4952_s13  }
   0x4   : > { %p37_p0 = scmp.ge.s32.totalorder %s35_s18, 2  ;;  %p3179_p1 = scmp.ge.s32.totalorder %s4357_s17, 1 }
   0x5   : > { %p391_p2 = scmp.lt.s32.totalorder %s4357_s17, 7 }
   0x6   : > { %s4957_s18 = smov (%p37_p0, %s35_s18), 0  ;;  %s4959_s19 = smov (!%p37_p0, %s39_s19), %s4353_s16 }
   0x7   : > { %p392_p3 = pnand %p3179_p1, %p391_p2  ;;  %p41_p4 = scmp.ge.s32.totalorder %s4959_s19, 3 }
   0x8   : > { %s3180_s20 = sshll.u32 (!%p392_p3), %s4341_s13, 5  ;;  %p473_p5 = scmp.eq.s32.totalorder (!%p392_p3), %s4345_s14, 2 }
   0x9   : > { %s4961_s19 = smov (%p41_p4, %s4959_s19), 0  ;;  %395 = sbr.rel (%p392_p3) target bundleno = 1907 (0x773), region = 60 }
   0xa   : > { %p453_p6 = scmp.lt.s32.totalorder (!%p392_p3), %s3180_s20, 63  ;;  %p483_p7 = scmp.lt.s32.totalorder (!%p392_p3), %s4345_s14, 2 }
   0xb   : > { %p492_p8 = scmp.eq.s32.totalorder (!%p392_p3), %s4345_s14, 0  ;;  %s4950_s0 = sld [smem:[#allocation5_spill]] (!%p392_p3) }
   0xc   : > { %p493_p10 = scmp.eq.s32.totalorder (!%p392_p3), %s4341_s13, 0 }
   0xe   : > { %p494_p11 = pnand (!%p392_p3), %p493_p10, %p492_p8 }
  0x10   : > { %s474_s21 = scalar_select %p473_p5, %s4341_s13, 0 }
  0x11   : > { %s4963_s20 = smov (!%p453_p6, %s3180_s20), 63  ;;  %500 = sbr.rel (%p494_p11) target bundleno = 24 (0x18), region = 64 }
  0x12   : > { %s3183_s22 = sshll.u32 %s474_s21, 1  ;;  %s3380_s23 = sshll.u32 %s4963_s20, 4  ;;  %v4359_v0 = vmov (!%p494_p11), 0.0  }
  0x13   : > { %p476_p9 = scmp.lt.s32.totalorder %s3183_s22, 3  ;;  %s4464_s26 = scalar_lea.vmem %s4950_s0, %s3380_s23  ;;  %501 = vst [vmem:[#allocation3] sm:$0xff] (!%p494_p11), %v4359_v0 }
  0x14   : > { %s4468_s27 = scalar_select %p483_p7, %s4345_s14, 2 }
  0x15   : > { %s4965_s22 = smov (!%p476_p9, %s3183_s22), 3 }
  0x16   : > { %s3184_s28 = sshll.u32 %s4965_s22, 2  ;;  %s3381_s12 = sshll.u32 %s4468_s27, 6 }
  0x17   : > { %s4473_s11 = scalar_lea.vmem %s4940_s2, %s3184_s28  ;;  %s4479_s24 = scalar_lea.vmem %s4942_s4, %s3381_s12 }
  0x18 PF: > { %v4360_v1 = vmov 0.0   ;;  %p3188_p12 = scmp.ne.s32.totalorder %s4345_s14, 0 }
  0x19   : > { %505 = vst [vmem:[#allocation2] sm:$0xff] %v4360_v1  ;;  %506 = vst [vmem:[#allocation2 + $0x8] sm:$0xff] %v4360_v1  ;;  %v4084_v2 = vld [vmem:[%s4939_s1 + $0x40] sm:$0xff] (!%p3188_p12)   ;;  %v4088_v6 = vld [vmem:[%s4939_s1 + $0x48] sm:$0xff] (!%p3188_p12)  }
  0x1a   : > { %507 = vst [vmem:[#allocation2 + $0x10] sm:$0xff] %v4360_v1  ;;  %508 = vst [vmem:[#allocation2 + $0x18] sm:$0xff] %v4360_v1  ;;  %v4085_v3 = vld [vmem:[%s4939_s1 + $0xc0] sm:$0xff] (!%p3188_p12)   ;;  %3382 = vmatprep.subr.bf16.mxu0 (!%p3188_p12), %v4084_v2  ;;  %v4089_v7 = vld [vmem:[%s4939_s1 + $0xc8] sm:$0xff] (!%p3188_p12)  }
  0x1b   : > { %509 = vst [vmem:[#allocation2 + $0x20] sm:$0xff] %v4360_v1  ;;  %510 = vst [vmem:[#allocation2 + $0x28] sm:$0xff] %v4360_v1  ;;  %v4086_v4 = vld [vmem:[%s4939_s1] sm:$0xff] (!%p3188_p12)   ;;  %3494 = vmatprep.subr.bf16.mxu1 (!%p3188_p12), %v4085_v3  ;;  %v4090_v8 = vld [vmem:[%s4939_s1 + $0x8] sm:$0xff] (!%p3188_p12)  }
  0x1c   : > { %511 = vst [vmem:[#allocation2 + $0x30] sm:$0xff] %v4360_v1  ;;  %512 = vst [vmem:[#allocation2 + $0x38] sm:$0xff] %v4360_v1  ;;  %v4087_v5 = vld [vmem:[%s4939_s1 + $0x80] sm:$0xff] (!%p3188_p12)   ;;  %3383 = vmatpush3.bf16.msra.mxu0 (!%p3188_p12), %v4086_v4  ;;  %v4091_v9 = vld [vmem:[%s4939_s1 + $0x88] sm:$0xff] (!%p3188_p12)  }
  0x1d   : > { %513 = vst [vmem:[#allocation2 + $0x40] sm:$0xff] %v4360_v1  ;;  %514 = vst [vmem:[#allocation2 + $0x48] sm:$0xff] %v4360_v1  ;;  %3495 = vmatpush3.bf16.msra.mxu1 (!%p3188_p12), %v4087_v5  ;;  %3384 = vmatprep.subr.bf16.mxu0 (!%p3188_p12), %v4088_v6  ;;  %v4092_v10 = vld [vmem:[%s4939_s1 + $0x50] sm:$0xff] (!%p3188_p12)   ;;  %v4096_v14 = vld [vmem:[%s4939_s1 + $0x58] sm:$0xff] (!%p3188_p12)  }
  0x1e   : > { %515 = vst [vmem:[#allocation2 + $0x50] sm:$0xff] %v4360_v1  ;;  %516 = vst [vmem:[#allocation2 + $0x58] sm:$0xff] %v4360_v1  ;;  %3496 = vmatprep.subr.bf16.mxu1 (!%p3188_p12), %v4089_v7  ;;  %v4093_v11 = vld [vmem:[%s4939_s1 + $0xd0] sm:$0xff] (!%p3188_p12)   ;;  %v4097_v15 = vld [vmem:[%s4939_s1 + $0xd8] sm:$0xff] (!%p3188_p12)  }
  0x1f   : > { %517 = vst [vmem:[#allocation2 + $0x60] sm:$0xff] %v4360_v1  ;;  %518 = vst [vmem:[#allocation2 + $0x68] sm:$0xff] %v4360_v1  ;;  %v4094_v12 = vld [vmem:[%s4939_s1 + $0x10] sm:$0xff] (!%p3188_p12)   ;;  %v4098_v16 = vld [vmem:[%s4939_s1 + $0x18] sm:$0xff] (!%p3188_p12)  }
  0x20   : > { %519 = vst [vmem:[#allocation2 + $0x70] sm:$0xff] %v4360_v1  ;;  %520 = vst [vmem:[#allocation2 + $0x78] sm:$0xff] %v4360_v1  ;;  %3385 = vmatpush3.bf16.msra.mxu0 (!%p3188_p12), %v4090_v8  ;;  %v4095_v13 = vld [vmem:[%s4939_s1 + $0x90] sm:$0xff] (!%p3188_p12)   ;;  %v4099_v17 = vld [vmem:[%s4939_s1 + $0x98] sm:$0xff] (!%p3188_p12)  }
  0x21   : > { %521 = vst [vmem:[#allocation2 + $0x80] sm:$0xff] %v4360_v1  ;;  %522 = vst [vmem:[#allocation2 + $0x88] sm:$0xff] %v4360_v1  ;;  %3497 = vmatpush3.bf16.msra.mxu1 (!%p3188_p12), %v4091_v9  ;;  %3386 = vmatprep.subr.bf16.mxu0 (!%p3188_p12), %v4092_v10  ;;  %v4100_v18 = vld [vmem:[%s4939_s1 + $0x60] sm:$0xff] (!%p3188_p12)   ;;  %v4104_v22 = vld [vmem:[%s4939_s1 + $0x68] sm:$0xff] (!%p3188_p12)  }
  0x22   : > { %523 = vst [vmem:[#allocation2 + $0x90] sm:$0xff] %v4360_v1  ;;  %524 = vst [vmem:[#allocation2 + $0x98] sm:$0xff] %v4360_v1  ;;  %539 = sbr.rel (%p3188_p12) target bundleno = 402 (0x192), region = 72  ;;  %3498 = vmatprep.subr.bf16.mxu1 (!%p3188_p12), %v4093_v11  ;;  %v4101_v19 = vld [vmem:[%s4939_s1 + $0xe0] sm:$0xff] (!%p3188_p12)   ;;  %v4105_v23 = vld [vmem:[%s4939_s1 + $0xe8] sm:$0xff] (!%p3188_p12)  }
  0x23   : > { %525 = vst [vmem:[#allocation2 + $0xa0] sm:$0xff] %v4360_v1  ;;  %526 = vst [vmem:[#allocation2 + $0xa8] sm:$0xff] %v4360_v1  ;;  %v4102_v20 = vld [vmem:[%s4939_s1 + $0x20] sm:$0xff] (!%p3188_p12)   ;;  %v4106_v24 = vld [vmem:[%s4939_s1 + $0x28] sm:$0xff] (!%p3188_p12)  }
  0x24   : > { %527 = vst [vmem:[#allocation2 + $0xb0] sm:$0xff] %v4360_v1  ;;  %528 = vst [vmem:[#allocation2 + $0xb8] sm:$0xff] %v4360_v1  ;;  %3387 = vmatpush3.bf16.msra.mxu0 (!%p3188_p12), %v4094_v12  ;;  %v4103_v21 = vld [vmem:[%s4939_s1 + $0xa0] sm:$0xff] (!%p3188_p12)   ;;  %v4107_v25 = vld [vmem:[%s4939_s1 + $0xa8] sm:$0xff] (!%p3188_p12)  }
  0x25   : > { %529 = vst [vmem:[#allocation2 + $0xc0] sm:$0xff] %v4360_v1  ;;  %530 = vst [vmem:[#allocation2 + $0xc8] sm:$0xff] %v4360_v1  ;;  %3499 = vmatpush3.bf16.msra.mxu1 (!%p3188_p12), %v4095_v13  ;;  %3388 = vmatprep.subr.bf16.mxu0 (!%p3188_p12), %v4096_v14  ;;  %v4108_v26 = vld [vmem:[%s4939_s1 + $0x70] sm:$0xff] (!%p3188_p12)   ;;  %v4112_v30 = vld [vmem:[%s4939_s1 + $0x78] sm:$0xff] (!%p3188_p12)  }
  0x26   : > { %531 = vst [vmem:[#allocation2 + $0xd0] sm:$0xff] %v4360_v1  ;;  %532 = vst [vmem:[#allocation2 + $0xd8] sm:$0xff] %v4360_v1  ;;  %3500 = vmatprep.subr.bf16.mxu1 (!%p3188_p12), %v4097_v15  ;;  %v4109_v27 = vld [vmem:[%s4939_s1 + $0xf0] sm:$0xff] (!%p3188_p12)   ;;  %v4113_v31 = vld [vmem:[%s4939_s1 + $0xf8] sm:$0xff] (!%p3188_p12)  }
  0x27   : > { %533 = vst [vmem:[#allocation2 + $0xe0] sm:$0xff] %v4360_v1  ;;  %534 = vst [vmem:[#allocation2 + $0xe8] sm:$0xff] %v4360_v1  ;;  %v4110_v28 = vld [vmem:[%s4939_s1 + $0x30] sm:$0xff] (!%p3188_p12)   ;;  %v4114_v32 = vld [vmem:[%s4939_s1 + $0x38] sm:$0xff] (!%p3188_p12)  }
  0x28   : > { %535 = vst [vmem:[#allocation2 + $0xf0] sm:$0xff] %v4360_v1  ;;  %536 = vst [vmem:[#allocation2 + $0xf8] sm:$0xff] %v4360_v1  ;;  %3389 = vmatpush3.bf16.msra.mxu0 (!%p3188_p12), %v4098_v16  ;;  %v4111_v29 = vld [vmem:[%s4939_s1 + $0xb0] sm:$0xff] (!%p3188_p12)   ;;  %v4115_v33 = vld [vmem:[%s4939_s1 + $0xb8] sm:$0xff] (!%p3188_p12)  }
  0x29   : > { %3501 = vmatpush3.bf16.msra.mxu1 %v4099_v17  ;;  %3390 = vmatprep.subr.bf16.mxu0 %v4100_v18  ;;  %v4116_v34 = vld [vmem:[%s4464_s26] ss:$16 sps:$4 sm:$0xff]   ;;  %v4118_v35 = vld [vmem:[%s4464_s26 + $0x4] ss:$16 sps:$4 sm:$0xff]   ;;  %v4119_v36 = vld [vmem:[%s4464_s26 + $0x8] ss:$16 sps:$4 sm:$0xff]  }
  0x2a   : > { %3502 = vmatprep.subr.bf16.mxu1 %v4101_v19  ;;  %v4121_v37 = vld [vmem:[%s4464_s26 + $0xc] ss:$16 sps:$4 sm:$0xff]   ;;  %1244 = vmatprep.mubr.bf16.mxu0 %v4118_v35  ;;  %v4122_v38 = vld [vmem:[%s4464_s26 + $0x24] ss:$16 sps:$4 sm:$0xff]   ;;  %v4126_v40 = vld [vmem:[%s4464_s26 + $0x20] ss:$16 sps:$4 sm:$0xff]  }
  0x2b   : > { %1405 = vmatprep.mubr.bf16.mxu1 %v4121_v37  ;;  %v4124_v39 = vld [vmem:[%s4464_s26 + $0x2c] ss:$16 sps:$4 sm:$0xff]   ;;  %v4127_v41 = vld [vmem:[%s4464_s26 + $0x28] ss:$16 sps:$4 sm:$0xff]   ;;  %v4128_v42 = vld [vmem:[%s4464_s26 + $0x44] ss:$16 sps:$4 sm:$0xff]  }
  0x2c   : > { %3391 = vmatpush3.bf16.msra.mxu0 %v4102_v20  ;;  %v4130_v43 = vld [vmem:[%s4464_s26 + $0x4c] ss:$16 sps:$4 sm:$0xff]   ;;  %v4132_v44 = vld [vmem:[%s4464_s26 + $0x40] ss:$16 sps:$4 sm:$0xff]   ;;  %v4133_v45 = vld [vmem:[%s4464_s26 + $0x48] ss:$16 sps:$4 sm:$0xff]  }
  0x2d   : > { %3503 = vmatpush3.bf16.msra.mxu1 %v4103_v21  ;;  %3392 = vmatprep.subr.bf16.mxu0 %v4104_v22  ;;  %v4134_v46 = vld [vmem:[%s4464_s26 + $0x64] ss:$16 sps:$4 sm:$0xff]   ;;  %v4136_v47 = vld [vmem:[%s4464_s26 + $0x6c] ss:$16 sps:$4 sm:$0xff]   ;;  %v4138_v48 = vld [vmem:[%s4464_s26 + $0x60] ss:$16 sps:$4 sm:$0xff]  }
  0x2e   : > { %3504 = vmatprep.subr.bf16.mxu1 %v4105_v23  ;;  %v4139_v49 = vld [vmem:[%s4464_s26 + $0x68] ss:$16 sps:$4 sm:$0xff]   ;;  %v4140_v50 = vld [vmem:[%s4464_s26 + $0x84] ss:$16 sps:$4 sm:$0xff]   ;;  %v4142_v51 = vld [vmem:[%s4464_s26 + $0x8c] ss:$16 sps:$4 sm:$0xff]  }
  0x2f   : > { %v4144_v52 = vld [vmem:[%s4464_s26 + $0x80] ss:$16 sps:$4 sm:$0xff]   ;;  %v4145_v53 = vld [vmem:[%s4464_s26 + $0x88] ss:$16 sps:$4 sm:$0xff]   ;;  %v4146_v54 = vld [vmem:[%s4464_s26 + $0xa4] ss:$16 sps:$4 sm:$0xff]  }
  0x30   : > { %3393 = vmatpush3.bf16.msra.mxu0 %v4106_v24  ;;  %v4148_v55 = vld [vmem:[%s4464_s26 + $0xac] ss:$16 sps:$4 sm:$0xff]   ;;  %v4150_v56 = vld [vmem:[%s4464_s26 + $0xa0] ss:$16 sps:$4 sm:$0xff]   ;;  %v4151_v57 = vld [vmem:[%s4464_s26 + $0xa8] ss:$16 sps:$4 sm:$0xff]  }
  0x31   : > { %3505 = vmatpush3.bf16.msra.mxu1 %v4107_v25  ;;  %3394 = vmatprep.subr.bf16.mxu0 %v4108_v26  ;;  %v4152_v58 = vld [vmem:[%s4464_s26 + $0xc4] ss:$16 sps:$4 sm:$0xff]   ;;  %v4154_v59 = vld [vmem:[%s4464_s26 + $0xcc] ss:$16 sps:$4 sm:$0xff]   ;;  %v4156_v60 = vld [vmem:[%s4464_s26 + $0xc0] ss:$16 sps:$4 sm:$0xff]  }
  0x32   : > { %3506 = vmatprep.subr.bf16.mxu1 %v4109_v27  ;;  %v4157_v61 = vld [vmem:[%s4464_s26 + $0xc8] ss:$16 sps:$4 sm:$0xff]   ;;  %v4158_v62 = vld [vmem:[%s4464_s26 + $0xe4] ss:$16 sps:$4 sm:$0xff]   ;;  %v4160_v63 = vld [vmem:[%s4464_s26 + $0xec] ss:$16 sps:$4 sm:$0xff]  }
  0x33   : > { %v4162_v0 = vld [vmem:[%s4464_s26 + $0xe0] ss:$16 sps:$4 sm:$0xff]   ;;  %v4163_v1 = vld [vmem:[%s4464_s26 + $0xe8] ss:$16 sps:$4 sm:$0xff]   ;;  %v4164_v2 = vld [vmem:[%s4464_s26 + $0x104] ss:$16 sps:$4 sm:$0xff]  }
  0x34   : > { %3395 = vmatpush3.bf16.msra.mxu0 %v4110_v28  ;;  %v4166_v3 = vld [vmem:[%s4464_s26 + $0x10c] ss:$16 sps:$4 sm:$0xff]   ;;  %v4168_v4 = vld [vmem:[%s4464_s26 + $0x100] ss:$16 sps:$4 sm:$0xff]   ;;  %v4169_v5 = vld [vmem:[%s4464_s26 + $0x108] ss:$16 sps:$4 sm:$0xff]  }
  0x35   : > { %3507 = vmatpush3.bf16.msra.mxu1 %v4111_v29  ;;  %3396 = vmatprep.subr.bf16.mxu0 %v4112_v30  ;;  %v4170_v6 = vld [vmem:[%s4464_s26 + $0x124] ss:$16 sps:$4 sm:$0xff]   ;;  %v4172_v7 = vld [vmem:[%s4464_s26 + $0x12c] ss:$16 sps:$4 sm:$0xff]   ;;  %v4174_v8 = vld [vmem:[%s4464_s26 + $0x120] ss:$16 sps:$4 sm:$0xff]  }
  0x36   : > { %3508 = vmatprep.subr.bf16.mxu1 %v4113_v31  ;;  %v4175_v9 = vld [vmem:[%s4464_s26 + $0x128] ss:$16 sps:$4 sm:$0xff]   ;;  %v4176_v10 = vld [vmem:[%s4464_s26 + $0x144] ss:$16 sps:$4 sm:$0xff]   ;;  %v4178_v11 = vld [vmem:[%s4464_s26 + $0x14c] ss:$16 sps:$4 sm:$0xff]  }
  0x37   : > { %v4180_v12 = vld [vmem:[%s4464_s26 + $0x140] ss:$16 sps:$4 sm:$0xff]   ;;  %v4181_v13 = vld [vmem:[%s4464_s26 + $0x148] ss:$16 sps:$4 sm:$0xff]   ;;  %v4182_v14 = vld [vmem:[%s4464_s26 + $0x164] ss:$16 sps:$4 sm:$0xff]  }
  0x38   : > { %3397 = vmatpush3.bf16.msra.mxu0 %v4114_v32  ;;  %v4184_v15 = vld [vmem:[%s4464_s26 + $0x16c] ss:$16 sps:$4 sm:$0xff]   ;;  %v4186_v16 = vld [vmem:[%s4464_s26 + $0x160] ss:$16 sps:$4 sm:$0xff]   ;;  %v4187_v17 = vld [vmem:[%s4464_s26 + $0x168] ss:$16 sps:$4 sm:$0xff]  }
  0x39   : > { %3509 = vmatpush3.bf16.msra.mxu1 %v4115_v33  ;;  %v4188_v18 = vld [vmem:[%s4464_s26 + $0x184] ss:$16 sps:$4 sm:$0xff]   ;;  %v4190_v19 = vld [vmem:[%s4464_s26 + $0x18c] ss:$16 sps:$4 sm:$0xff]   ;;  %v4192_v20 = vld [vmem:[%s4464_s26 + $0x180] ss:$16 sps:$4 sm:$0xff]  }
  0x3a   : > { %v4193_v21 = vld [vmem:[%s4464_s26 + $0x188] ss:$16 sps:$4 sm:$0xff]   ;;  %v4194_v22 = vld [vmem:[%s4464_s26 + $0x1a4] ss:$16 sps:$4 sm:$0xff]   ;;  %v4196_v23 = vld [vmem:[%s4464_s26 + $0x1ac] ss:$16 sps:$4 sm:$0xff]  }
  0x3b   : > { %1245 = vmatmul.mubr.bf16.vlgmr.msra.gmra.mrb[0].mxu0 %v4116_v34  ;;  %v4198_v24 = vld [vmem:[%s4464_s26 + $0x1a0] ss:$16 sps:$4 sm:$0xff]   ;;  %v4199_v25 = vld [vmem:[%s4464_s26 + $0x1a8] ss:$16 sps:$4 sm:$0xff]   ;;  %v4200_v26 = vld [vmem:[%s4464_s26 + $0x1c4] ss:$16 sps:$4 sm:$0xff]  }
  0x3c   : > { %1406 = vmatmul.mubr.bf16.vlgmr.msra.gmra.mrb[0].mxu1 %v4119_v36  ;;  %1252 = vmatprep.mubr.bf16.mxu0 %v4122_v38  ;;  %v4202_v27 = vld [vmem:[%s4464_s26 + $0x1cc] ss:$16 sps:$4 sm:$0xff]   ;;  %v4204_v28 = vld [vmem:[%s4464_s26 + $0x1c0] ss:$16 sps:$4 sm:$0xff]   ;;  %v4205_v29 = vld [vmem:[%s4464_s26 + $0x1c8] ss:$16 sps:$4 sm:$0xff]  }
  0x3d   : > { %1413 = vmatprep.mubr.bf16.mxu1 %v4124_v39  ;;  %v4206_v30 = vld [vmem:[%s4464_s26 + $0x1e4] ss:$16 sps:$4 sm:$0xff]   ;;  %v4208_v31 = vld [vmem:[%s4464_s26 + $0x1ec] ss:$16 sps:$4 sm:$0xff]   ;;  %v4210_v32 = vld [vmem:[%s4464_s26 + $0x1e0] ss:$16 sps:$4 sm:$0xff]  }
  0x3e   : > { %v4211_v33 = vld [vmem:[%s4464_s26 + $0x1e8] ss:$16 sps:$4 sm:$0xff]  }
  0x43   : > { %1253 = vmatmul.mubr.bf16.gmra.mrb[4].mxu0 %v4126_v40 }
  0x44   : > { %1414 = vmatmul.mubr.bf16.gmra.mrb[4].mxu1 %v4127_v41  ;;  %1260 = vmatprep.mubr.bf16.mxu0 %v4128_v42 }
  0x45   : > { %1421 = vmatprep.mubr.bf16.mxu1 %v4130_v43  ;;  %v540_v43 = vld [vmem:[#allocation2] sm:$0xff] }
  0x4b   : > { %1261 = vmatmul.mubr.bf16.gmra.mrb[8].mxu0 %v4132_v44 }
  0x4c   : > { %1422 = vmatmul.mubr.bf16.gmra.mrb[8].mxu1 %v4133_v45  ;;  %1268 = vmatprep.mubr.bf16.mxu0 %v4134_v46 }
  0x4d   : > { %1429 = vmatprep.mubr.bf16.mxu1 %v4136_v47 }
  0x53   : > { %1269 = vmatmul.mubr.bf16.gmra.mrb[12].mxu0 %v4138_v48  ;;  %v541_v48 = vld [vmem:[#allocation2 + $0x8] sm:$0xff] }
  0x54   : > { %1430 = vmatmul.mubr.bf16.gmra.mrb[12].mxu1 %v4139_v49  ;;  %1276 = vmatprep.mubr.bf16.mxu0 %v4140_v50 }
  0x55   : > { %1437 = vmatprep.mubr.bf16.mxu1 %v4142_v51 }
  0x5b   : > { %1277 = vmatmul.mubr.bf16.gmra.mrb[16].mxu0 %v4144_v52 }
  0x5c   : > { %1438 = vmatmul.mubr.bf16.gmra.mrb[16].mxu1 %v4145_v53  ;;  %1284 = vmatprep.mubr.bf16.mxu0 %v4146_v54 }
  0x5d   : > { %1445 = vmatprep.mubr.bf16.mxu1 %v4148_v55 }
  0x63   : > { %1285 = vmatmul.mubr.bf16.gmra.mrb[20].mxu0 %v4150_v56 }
  0x64   : > { %1446 = vmatmul.mubr.bf16.gmra.mrb[20].mxu1 %v4151_v57  ;;  %1292 = vmatprep.mubr.bf16.mxu0 %v4152_v58 }
  0x65   : > { %1453 = vmatprep.mubr.bf16.mxu1 %v4154_v59 }
  0x6b   : > { %1293 = vmatmul.mubr.bf16.gmra.mrb[24].mxu0 %v4156_v60 }
  0x6c   : > { %1454 = vmatmul.mubr.bf16.gmra.mrb[24].mxu1 %v4157_v61  ;;  %1300 = vmatprep.mubr.bf16.mxu0 %v4158_v62  ;;  %v542_v61 = vld [vmem:[#allocation2 + $0x10] sm:$0xff] }
  0x6d   : > { %1461 = vmatprep.mubr.bf16.mxu1 %v4160_v63 }
  0x73   : > { %1301 = vmatmul.mubr.bf16.gmra.mrb[28].mxu0 %v4162_v0 }
  0x74   : > { %1462 = vmatmul.mubr.bf16.gmra.mrb[28].mxu1 %v4163_v1  ;;  %1308 = vmatprep.mubr.bf16.mxu0 %v4164_v2  ;;  %v543_v2 = vld [vmem:[#allocation2 + $0x18] sm:$0xff] }
  0x75   : > { %1469 = vmatprep.mubr.bf16.mxu1 %v4166_v3 }
  0x7b   : > { %1309 = vmatmul.mubr.bf16.gmra.mrb[32].mxu0 %v4168_v4 }
  0x7c   : > { %1470 = vmatmul.mubr.bf16.gmra.mrb[32].mxu1 %v4169_v5  ;;  %1316 = vmatprep.mubr.bf16.mxu0 %v4170_v6 }
  0x7d   : > { %1477 = vmatprep.mubr.bf16.mxu1 %v4172_v7 }
  0x83   : > { %1317 = vmatmul.mubr.bf16.gmra.mrb[36].mxu0 %v4174_v8 }
  0x84   : > { %1478 = vmatmul.mubr.bf16.gmra.mrb[36].mxu1 %v4175_v9  ;;  %1324 = vmatprep.mubr.bf16.mxu0 %v4176_v10 }
  0x85   : > { %1485 = vmatprep.mubr.bf16.mxu1 %v4178_v11 }
  0x8b   : > { %1325 = vmatmul.mubr.bf16.gmra.mrb[40].mxu0 %v4180_v12 }
  0x8c   : > { %1486 = vmatmul.mubr.bf16.gmra.mrb[40].mxu1 %v4181_v13  ;;  %1332 = vmatprep.mubr.bf16.mxu0 %v4182_v14 }
  0x8d   : > { %1493 = vmatprep.mubr.bf16.mxu1 %v4184_v15  ;;  %v544_v15 = vld [vmem:[#allocation2 + $0x20] sm:$0xff] }
  0x93   : > { %1333 = vmatmul.mubr.bf16.gmra.mrb[44].mxu0 %v4186_v16 }
  0x94   : > { %1494 = vmatmul.mubr.bf16.gmra.mrb[44].mxu1 %v4187_v17  ;;  %1340 = vmatprep.mubr.bf16.mxu0 %v4188_v18 }
  0x95   : > { %1501 = vmatprep.mubr.bf16.mxu1 %v4190_v19 }
  0x9b   : > { %1341 = vmatmul.mubr.bf16.gmra.mrb[48].mxu0 %v4192_v20  ;;  %v545_v20 = vld [vmem:[#allocation2 + $0x28] sm:$0xff] }
  0x9c   : > { %1502 = vmatmul.mubr.bf16.gmra.mrb[48].mxu1 %v4193_v21  ;;  %1348 = vmatprep.mubr.bf16.mxu0 %v4194_v22 }
  0x9d   : > { %1509 = vmatprep.mubr.bf16.mxu1 %v4196_v23 }
  0xa3   : > { %1349 = vmatmul.mubr.bf16.gmra.mrb[52].mxu0 %v4198_v24 }
  0xa4   : > { %1510 = vmatmul.mubr.bf16.gmra.mrb[52].mxu1 %v4199_v25  ;;  %1356 = vmatprep.mubr.bf16.mxu0 %v4200_v26 }
  0xa5   : > { %1517 = vmatprep.mubr.bf16.mxu1 %v4202_v27 }
  0xab   : > { %1357 = vmatmul.mubr.bf16.gmra.mrb[56].mxu0 %v4204_v28 }
  0xac   : > { %1518 = vmatmul.mubr.bf16.gmra.mrb[56].mxu1 %v4205_v29  ;;  %1364 = vmatprep.mubr.bf16.mxu0 %v4206_v30 }
  0xad   : > { %1525 = vmatprep.mubr.bf16.mxu1 %v4208_v31 }
  0xb3   : > { %1365 = vmatmul.mubr.bf16.gmra.mrb[60].mxu0 %v4210_v32 }
  0xb4   : > { %1526 = vmatmul.mubr.bf16.gmra.mrb[60].mxu1 %v4211_v33  ;;  %v546_v33 = vld [vmem:[#allocation2 + $0x30] sm:$0xff] }
 0x10e   : > { %v3398_v34 = vpop.f32.mrb[0].mxu0 }
 0x10f   : > { %v3510_v35 = vpop.f32.mrb[0].mxu1  ;;  %v3399_v36 = vpop.f32.mrb[1].mxu0 }
 0x110   : > { %v3400_v37 = vadd.f32 %v3399_v36, %v3398_v34  ;;  %v3511_v38 = vpop.f32.mrb[1].mxu1  ;;  %v3401_v39 = vpop.f32.mrb[2].mxu0 }
 0x111   : > { %v3512_v40 = vadd.f32 %v3511_v38, %v3510_v35  ;;  %v3513_v41 = vpop.f32.mrb[2].mxu1  ;;  %v3402_v42 = vpop.f32.mrb[3].mxu0  ;;  %v547_v38 = vld [vmem:[#allocation2 + $0x38] sm:$0xff] }
 0x112   : > { %v3403_v44 = vadd.f32 %v3402_v42, %v3401_v39  ;;  %v3514_v45 = vpop.f32.mrb[3].mxu1 }
 0x113   : > { %v1408_v46 = vadd.f32 %v3512_v40, %v3400_v37  ;;  %v3515_v47 = vadd.f32 %v3514_v45, %v3513_v41 }
 0x115   : > { %v1534_v49 = vadd.f32 %v1408_v46, %v540_v43  ;;  %v1411_v50 = vadd.f32 %v3515_v47, %v3403_v44 }
 0x116   : > { %v3404_v51 = vpop.f32.mrb[4].mxu0 }
 0x117   : > { %1566 = vst [vmem:[#allocation2] sm:$0xff] %v1534_v49  ;;  %v1535_v52 = vadd.f32 %v1411_v50, %v541_v48  ;;  %v3516_v53 = vpop.f32.mrb[4].mxu1  ;;  %v3405_v54 = vpop.f32.mrb[5].mxu0 }
 0x118   : > { %v3406_v55 = vadd.f32 %v3405_v54, %v3404_v51  ;;  %v3517_v56 = vpop.f32.mrb[5].mxu1  ;;  %v3407_v57 = vpop.f32.mrb[6].mxu0  ;;  %v548_v51 = vld [vmem:[#allocation2 + $0x40] sm:$0xff] }
 0x119   : > { %1567 = vst [vmem:[#allocation2 + $0x8] sm:$0xff] %v1535_v52  ;;  %v3518_v58 = vadd.f32 %v3517_v56, %v3516_v53  ;;  %v3519_v59 = vpop.f32.mrb[6].mxu1  ;;  %v3408_v60 = vpop.f32.mrb[7].mxu0  ;;  %v549_v56 = vld [vmem:[#allocation2 + $0x48] sm:$0xff] }
 0x11a   : > { %v3409_v62 = vadd.f32 %v3408_v60, %v3407_v57  ;;  %v3520_v63 = vpop.f32.mrb[7].mxu1 }
 0x11b   : > { %v1416_v0 = vadd.f32 %v3518_v58, %v3406_v55  ;;  %v3521_v1 = vadd.f32 %v3520_v63, %v3519_v59 }
 0x11d   : > { %v1536_v3 = vadd.f32 %v1416_v0, %v542_v61  ;;  %v1419_v4 = vadd.f32 %v3521_v1, %v3409_v62 }
 0x11e   : > { %v3410_v5 = vpop.f32.mrb[8].mxu0 }
 0x11f   : > { %1568 = vst [vmem:[#allocation2 + $0x10] sm:$0xff] %v1536_v3  ;;  %v1537_v6 = vadd.f32 %v1419_v4, %v543_v2  ;;  %v3522_v7 = vpop.f32.mrb[8].mxu1  ;;  %v3411_v8 = vpop.f32.mrb[9].mxu0 }
 0x120   : > { %v3412_v9 = vadd.f32 %v3411_v8, %v3410_v5  ;;  %v3523_v10 = vpop.f32.mrb[9].mxu1  ;;  %v3413_v11 = vpop.f32.mrb[10].mxu0  ;;  %v550_v5 = vld [vmem:[#allocation2 + $0x50] sm:$0xff] }
 0x121   : > { %1569 = vst [vmem:[#allocation2 + $0x18] sm:$0xff] %v1537_v6  ;;  %v3524_v12 = vadd.f32 %v3523_v10, %v3522_v7  ;;  %v3525_v13 = vpop.f32.mrb[10].mxu1  ;;  %v3414_v14 = vpop.f32.mrb[11].mxu0  ;;  %v551_v10 = vld [vmem:[#allocation2 + $0x58] sm:$0xff] }
 0x122   : > { %v3415_v16 = vadd.f32 %v3414_v14, %v3413_v11  ;;  %v3526_v17 = vpop.f32.mrb[11].mxu1 }
 0x123   : > { %v1424_v18 = vadd.f32 %v3524_v12, %v3412_v9  ;;  %v3527_v19 = vadd.f32 %v3526_v17, %v3525_v13 }
 0x125   : > { %v1538_v21 = vadd.f32 %v1424_v18, %v544_v15  ;;  %v1427_v22 = vadd.f32 %v3527_v19, %v3415_v16 }
 0x126   : > { %v3416_v23 = vpop.f32.mrb[12].mxu0 }
 0x127   : > { %1570 = vst [vmem:[#allocation2 + $0x20] sm:$0xff] %v1538_v21  ;;  %v1539_v24 = vadd.f32 %v1427_v22, %v545_v20  ;;  %v3528_v25 = vpop.f32.mrb[12].mxu1  ;;  %v3417_v26 = vpop.f32.mrb[13].mxu0 }
 0x128   : > { %v3418_v27 = vadd.f32 %v3417_v26, %v3416_v23  ;;  %v3529_v28 = vpop.f32.mrb[13].mxu1  ;;  %v3419_v29 = vpop.f32.mrb[14].mxu0  ;;  %v552_v23 = vld [vmem:[#allocation2 + $0x60] sm:$0xff] }
 0x129   : > { %1571 = vst [vmem:[#allocation2 + $0x28] sm:$0xff] %v1539_v24  ;;  %v3530_v30 = vadd.f32 %v3529_v28, %v3528_v25  ;;  %v3531_v31 = vpop.f32.mrb[14].mxu1  ;;  %v3420_v32 = vpop.f32.mrb[15].mxu0  ;;  %v553_v28 = vld [vmem:[#allocation2 + $0x68] sm:$0xff] }
 0x12a   : > { %v3421_v34 = vadd.f32 %v3420_v32, %v3419_v29  ;;  %v3532_v35 = vpop.f32.mrb[15].mxu1 }
 0x12b   : > { %v1432_v36 = vadd.f32 %v3530_v30, %v3418_v27  ;;  %v3533_v37 = vadd.f32 %v3532_v35, %v3531_v31 }
 0x12d   : > { %v1540_v39 = vadd.f32 %v1432_v36, %v546_v33  ;;  %v1435_v40 = vadd.f32 %v3533_v37, %v3421_v34 }
 0x12e   : > { %v3422_v41 = vpop.f32.mrb[16].mxu0 }
 0x12f   : > { %1572 = vst [vmem:[#allocation2 + $0x30] sm:$0xff] %v1540_v39  ;;  %v1541_v42 = vadd.f32 %v1435_v40, %v547_v38  ;;  %v3534_v43 = vpop.f32.mrb[16].mxu1  ;;  %v3423_v44 = vpop.f32.mrb[17].mxu0 }
 0x130   : > { %v3424_v45 = vadd.f32 %v3423_v44, %v3422_v41  ;;  %v3535_v46 = vpop.f32.mrb[17].mxu1  ;;  %v3425_v47 = vpop.f32.mrb[18].mxu0  ;;  %v554_v41 = vld [vmem:[#allocation2 + $0x70] sm:$0xff] }
 0x131   : > { %1573 = vst [vmem:[#allocation2 + $0x38] sm:$0xff] %v1541_v42  ;;  %v3536_v48 = vadd.f32 %v3535_v46, %v3534_v43  ;;  %v3537_v49 = vpop.f32.mrb[18].mxu1  ;;  %v3426_v50 = vpop.f32.mrb[19].mxu0  ;;  %v555_v46 = vld [vmem:[#allocation2 + $0x78] sm:$0xff] }
 0x132   : > { %v3427_v52 = vadd.f32 %v3426_v50, %v3425_v47  ;;  %v3538_v53 = vpop.f32.mrb[19].mxu1 }
 0x133   : > { %v1440_v54 = vadd.f32 %v3536_v48, %v3424_v45  ;;  %v3539_v55 = vadd.f32 %v3538_v53, %v3537_v49 }
 0x135   : > { %v1542_v57 = vadd.f32 %v1440_v54, %v548_v51  ;;  %v1443_v58 = vadd.f32 %v3539_v55, %v3427_v52 }
 0x136   : > { %v3428_v59 = vpop.f32.mrb[20].mxu0 }
 0x137   : > { %1574 = vst [vmem:[#allocation2 + $0x40] sm:$0xff] %v1542_v57  ;;  %v1543_v60 = vadd.f32 %v1443_v58, %v549_v56  ;;  %v3540_v61 = vpop.f32.mrb[20].mxu1  ;;  %v3429_v62 = vpop.f32.mrb[21].mxu0 }
 0x138   : > { %v3430_v63 = vadd.f32 %v3429_v62, %v3428_v59  ;;  %v3541_v0 = vpop.f32.mrb[21].mxu1  ;;  %v3431_v1 = vpop.f32.mrb[22].mxu0  ;;  %v556_v59 = vld [vmem:[#allocation2 + $0x80] sm:$0xff] }
 0x139   : > { %1575 = vst [vmem:[#allocation2 + $0x48] sm:$0xff] %v1543_v60  ;;  %v3542_v2 = vadd.f32 %v3541_v0, %v3540_v61  ;;  %v3543_v3 = vpop.f32.mrb[22].mxu1  ;;  %v3432_v4 = vpop.f32.mrb[23].mxu0  ;;  %v557_v0 = vld [vmem:[#allocation2 + $0x88] sm:$0xff] }
 0x13a   : > { %v3433_v6 = vadd.f32 %v3432_v4, %v3431_v1  ;;  %v3544_v7 = vpop.f32.mrb[23].mxu1 }
 0x13b   : > { %v1448_v8 = vadd.f32 %v3542_v2, %v3430_v63  ;;  %v3545_v9 = vadd.f32 %v3544_v7, %v3543_v3 }
 0x13d   : > { %v1544_v11 = vadd.f32 %v1448_v8, %v550_v5  ;;  %v1451_v12 = vadd.f32 %v3545_v9, %v3433_v6 }
 0x13e   : > { %v3434_v13 = vpop.f32.mrb[24].mxu0 }
 0x13f   : > { %1576 = vst [vmem:[#allocation2 + $0x50] sm:$0xff] %v1544_v11  ;;  %v1545_v14 = vadd.f32 %v1451_v12, %v551_v10  ;;  %v3546_v15 = vpop.f32.mrb[24].mxu1  ;;  %v3435_v16 = vpop.f32.mrb[25].mxu0 }
 0x140   : > { %v3436_v17 = vadd.f32 %v3435_v16, %v3434_v13  ;;  %v3547_v18 = vpop.f32.mrb[25].mxu1  ;;  %v3437_v19 = vpop.f32.mrb[26].mxu0  ;;  %v558_v13 = vld [vmem:[#allocation2 + $0x90] sm:$0xff] }
 0x141   : > { %1577 = vst [vmem:[#allocation2 + $0x58] sm:$0xff] %v1545_v14  ;;  %v3548_v20 = vadd.f32 %v3547_v18, %v3546_v15  ;;  %v3549_v21 = vpop.f32.mrb[26].mxu1  ;;  %v3438_v22 = vpop.f32.mrb[27].mxu0  ;;  %v559_v18 = vld [vmem:[#allocation2 + $0x98] sm:$0xff] }
 0x142   : > { %v3439_v24 = vadd.f32 %v3438_v22, %v3437_v19  ;;  %v3550_v25 = vpop.f32.mrb[27].mxu1 }
 0x143   : > { %v1456_v26 = vadd.f32 %v3548_v20, %v3436_v17  ;;  %v3551_v27 = vadd.f32 %v3550_v25, %v3549_v21 }
 0x145   : > { %v1546_v29 = vadd.f32 %v1456_v26, %v552_v23  ;;  %v1459_v30 = vadd.f32 %v3551_v27, %v3439_v24 }
 0x146   : > { %v3440_v31 = vpop.f32.mrb[28].mxu0 }
 0x147   : > { %1578 = vst [vmem:[#allocation2 + $0x60] sm:$0xff] %v1546_v29  ;;  %v1547_v32 = vadd.f32 %v1459_v30, %v553_v28  ;;  %v3552_v33 = vpop.f32.mrb[28].mxu1  ;;  %v3441_v34 = vpop.f32.mrb[29].mxu0 }
 0x148   : > { %v3442_v35 = vadd.f32 %v3441_v34, %v3440_v31  ;;  %v3553_v36 = vpop.f32.mrb[29].mxu1  ;;  %v3443_v37 = vpop.f32.mrb[30].mxu0  ;;  %v560_v31 = vld [vmem:[#allocation2 + $0xa0] sm:$0xff] }
 0x149   : > { %1579 = vst [vmem:[#allocation2 + $0x68] sm:$0xff] %v1547_v32  ;;  %v3554_v38 = vadd.f32 %v3553_v36, %v3552_v33  ;;  %v3555_v39 = vpop.f32.mrb[30].mxu1  ;;  %v3444_v40 = vpop.f32.mrb[31].mxu0  ;;  %v561_v36 = vld [vmem:[#allocation2 + $0xa8] sm:$0xff] }
 0x14a   : > { %v3445_v42 = vadd.f32 %v3444_v40, %v3443_v37  ;;  %v3556_v43 = vpop.f32.mrb[31].mxu1 }
 0x14b   : > { %v1464_v44 = vadd.f32 %v3554_v38, %v3442_v35  ;;  %v3557_v45 = vadd.f32 %v3556_v43, %v3555_v39 }
 0x14d   : > { %v1548_v47 = vadd.f32 %v1464_v44, %v554_v41  ;;  %v1467_v48 = vadd.f32 %v3557_v45, %v3445_v42 }
 0x14e   : > { %v3446_v49 = vpop.f32.mrb[32].mxu0 }
 0x14f   : > { %1580 = vst [vmem:[#allocation2 + $0x70] sm:$0xff] %v1548_v47  ;;  %v1549_v50 = vadd.f32 %v1467_v48, %v555_v46  ;;  %v3558_v51 = vpop.f32.mrb[32].mxu1  ;;  %v3447_v52 = vpop.f32.mrb[33].mxu0 }
 0x150   : > { %v3448_v53 = vadd.f32 %v3447_v52, %v3446_v49  ;;  %v3559_v54 = vpop.f32.mrb[33].mxu1  ;;  %v3449_v55 = vpop.f32.mrb[34].mxu0  ;;  %v562_v49 = vld [vmem:[#allocation2 + $0xb0] sm:$0xff] }
 0x151   : > { %1581 = vst [vmem:[#allocation2 + $0x78] sm:$0xff] %v1549_v50  ;;  %v3560_v56 = vadd.f32 %v3559_v54, %v3558_v51  ;;  %v3561_v57 = vpop.f32.mrb[34].mxu1  ;;  %v3450_v58 = vpop.f32.mrb[35].mxu0  ;;  %v563_v54 = vld [vmem:[#allocation2 + $0xb8] sm:$0xff] }
 0x152   : > { %v3451_v60 = vadd.f32 %v3450_v58, %v3449_v55  ;;  %v3562_v61 = vpop.f32.mrb[35].mxu1 }
 0x153   : > { %v1472_v62 = vadd.f32 %v3560_v56, %v3448_v53  ;;  %v3563_v63 = vadd.f32 %v3562_v61, %v3561_v57 }
 0x155   : > { %v1550_v1 = vadd.f32 %v1472_v62, %v556_v59  ;;  %v1475_v2 = vadd.f32 %v3563_v63, %v3451_v60 }
 0x156   : > { %v3452_v3 = vpop.f32.mrb[36].mxu0 }
 0x157   : > { %1582 = vst [vmem:[#allocation2 + $0x80] sm:$0xff] %v1550_v1  ;;  %v1551_v4 = vadd.f32 %v1475_v2, %v557_v0  ;;  %v3564_v5 = vpop.f32.mrb[36].mxu1  ;;  %v3453_v6 = vpop.f32.mrb[37].mxu0 }
 0x158   : > { %v3454_v7 = vadd.f32 %v3453_v6, %v3452_v3  ;;  %v3565_v8 = vpop.f32.mrb[37].mxu1  ;;  %v3455_v9 = vpop.f32.mrb[38].mxu0  ;;  %v564_v3 = vld [vmem:[#allocation2 + $0xc0] sm:$0xff] }
 0x159   : > { %1583 = vst [vmem:[#allocation2 + $0x88] sm:$0xff] %v1551_v4  ;;  %v3566_v10 = vadd.f32 %v3565_v8, %v3564_v5  ;;  %v3567_v11 = vpop.f32.mrb[38].mxu1  ;;  %v3456_v12 = vpop.f32.mrb[39].mxu0  ;;  %v565_v8 = vld [vmem:[#allocation2 + $0xc8] sm:$0xff] }
 0x15a   : > { %v3457_v14 = vadd.f32 %v3456_v12, %v3455_v9  ;;  %v3568_v15 = vpop.f32.mrb[39].mxu1 }
 0x15b   : > { %v1480_v16 = vadd.f32 %v3566_v10, %v3454_v7  ;;  %v3569_v17 = vadd.f32 %v3568_v15, %v3567_v11 }
 0x15d   : > { %v1552_v19 = vadd.f32 %v1480_v16, %v558_v13  ;;  %v1483_v20 = vadd.f32 %v3569_v17, %v3457_v14 }
 0x15e   : > { %v3458_v21 = vpop.f32.mrb[40].mxu0 }
 0x15f   : > { %1584 = vst [vmem:[#allocation2 + $0x90] sm:$0xff] %v1552_v19  ;;  %v1553_v22 = vadd.f32 %v1483_v20, %v559_v18  ;;  %v3570_v23 = vpop.f32.mrb[40].mxu1  ;;  %v3459_v24 = vpop.f32.mrb[41].mxu0 }
 0x160   : > { %v3460_v25 = vadd.f32 %v3459_v24, %v3458_v21  ;;  %v3571_v26 = vpop.f32.mrb[41].mxu1  ;;  %v3461_v27 = vpop.f32.mrb[42].mxu0  ;;  %v566_v21 = vld [vmem:[#allocation2 + $0xd0] sm:$0xff] }
 0x161   : > { %1585 = vst [vmem:[#allocation2 + $0x98] sm:$0xff] %v1553_v22  ;;  %v3572_v28 = vadd.f32 %v3571_v26, %v3570_v23  ;;  %v3573_v29 = vpop.f32.mrb[42].mxu1  ;;  %v3462_v30 = vpop.f32.mrb[43].mxu0  ;;  %v567_v26 = vld [vmem:[#allocation2 + $0xd8] sm:$0xff] }
 0x162   : > { %v3463_v32 = vadd.f32 %v3462_v30, %v3461_v27  ;;  %v3574_v33 = vpop.f32.mrb[43].mxu1 }
 0x163   : > { %v1488_v34 = vadd.f32 %v3572_v28, %v3460_v25  ;;  %v3575_v35 = vadd.f32 %v3574_v33, %v3573_v29 }
 0x165   : > { %v1554_v37 = vadd.f32 %v1488_v34, %v560_v31  ;;  %v1491_v38 = vadd.f32 %v3575_v35, %v3463_v32 }
 0x166   : > { %v3464_v39 = vpop.f32.mrb[44].mxu0 }
 0x167   : > { %1586 = vst [vmem:[#allocation2 + $0xa0] sm:$0xff] %v1554_v37  ;;  %v1555_v40 = vadd.f32 %v1491_v38, %v561_v36  ;;  %v3576_v41 = vpop.f32.mrb[44].mxu1  ;;  %v3465_v42 = vpop.f32.mrb[45].mxu0 }
 0x168   : > { %v3466_v43 = vadd.f32 %v3465_v42, %v3464_v39  ;;  %v3577_v44 = vpop.f32.mrb[45].mxu1  ;;  %v3467_v45 = vpop.f32.mrb[46].mxu0  ;;  %v568_v39 = vld [vmem:[#allocation2 + $0xe0] sm:$0xff] }
 0x169   : > { %1587 = vst [vmem:[#allocation2 + $0xa8] sm:$0xff] %v1555_v40  ;;  %v3578_v46 = vadd.f32 %v3577_v44, %v3576_v41  ;;  %v3579_v47 = vpop.f32.mrb[46].mxu1  ;;  %v3468_v48 = vpop.f32.mrb[47].mxu0  ;;  %v569_v44 = vld [vmem:[#allocation2 + $0xe8] sm:$0xff] }
 0x16a   : > { %v3469_v50 = vadd.f32 %v3468_v48, %v3467_v45  ;;  %v3580_v51 = vpop.f32.mrb[47].mxu1 }
 0x16b   : > { %v1496_v52 = vadd.f32 %v3578_v46, %v3466_v43  ;;  %v3581_v53 = vadd.f32 %v3580_v51, %v3579_v47 }
 0x16d   : > { %v1556_v55 = vadd.f32 %v1496_v52, %v562_v49  ;;  %v1499_v56 = vadd.f32 %v3581_v53, %v3469_v50 }
 0x16e   : > { %v3470_v57 = vpop.f32.mrb[48].mxu0 }
 0x16f   : > { %1588 = vst [vmem:[#allocation2 + $0xb0] sm:$0xff] %v1556_v55  ;;  %v1557_v58 = vadd.f32 %v1499_v56, %v563_v54  ;;  %v3582_v59 = vpop.f32.mrb[48].mxu1  ;;  %v3471_v60 = vpop.f32.mrb[49].mxu0 }
 0x170   : > { %v3472_v61 = vadd.f32 %v3471_v60, %v3470_v57  ;;  %v3583_v62 = vpop.f32.mrb[49].mxu1  ;;  %v3473_v63 = vpop.f32.mrb[50].mxu0  ;;  %v570_v57 = vld [vmem:[#allocation2 + $0xf0] sm:$0xff] }
 0x171   : > { %1589 = vst [vmem:[#allocation2 + $0xb8] sm:$0xff] %v1557_v58  ;;  %v3584_v0 = vadd.f32 %v3583_v62, %v3582_v59  ;;  %v3585_v1 = vpop.f32.mrb[50].mxu1  ;;  %v3474_v2 = vpop.f32.mrb[51].mxu0  ;;  %v571_v62 = vld [vmem:[#allocation2 + $0xf8] sm:$0xff] }
 0x172   : > { %v3475_v4 = vadd.f32 %v3474_v2, %v3473_v63  ;;  %v3586_v5 = vpop.f32.mrb[51].mxu1 }
 0x173   : > { %v1504_v6 = vadd.f32 %v3584_v0, %v3472_v61  ;;  %v3587_v7 = vadd.f32 %v3586_v5, %v3585_v1 }
 0x175   : > { %v1558_v9 = vadd.f32 %v1504_v6, %v564_v3  ;;  %v1507_v10 = vadd.f32 %v3587_v7, %v3475_v4 }
 0x176   : > { %v3476_v11 = vpop.f32.mrb[52].mxu0 }
 0x177   : > { %1590 = vst [vmem:[#allocation2 + $0xc0] sm:$0xff] %v1558_v9  ;;  %v1559_v12 = vadd.f32 %v1507_v10, %v565_v8  ;;  %v3588_v13 = vpop.f32.mrb[52].mxu1  ;;  %v3477_v14 = vpop.f32.mrb[53].mxu0 }
 0x178   : > { %v3478_v15 = vadd.f32 %v3477_v14, %v3476_v11  ;;  %v3589_v16 = vpop.f32.mrb[53].mxu1  ;;  %v3479_v17 = vpop.f32.mrb[54].mxu0 }
 0x179   : > { %1591 = vst [vmem:[#allocation2 + $0xc8] sm:$0xff] %v1559_v12  ;;  %v3590_v18 = vadd.f32 %v3589_v16, %v3588_v13  ;;  %v3591_v19 = vpop.f32.mrb[54].mxu1  ;;  %v3480_v20 = vpop.f32.mrb[55].mxu0 }
 0x17a   : > { %v3481_v22 = vadd.f32 %v3480_v20, %v3479_v17  ;;  %v3592_v23 = vpop.f32.mrb[55].mxu1 }
 0x17b   : > { %v1512_v24 = vadd.f32 %v3590_v18, %v3478_v15  ;;  %v3593_v25 = vadd.f32 %v3592_v23, %v3591_v19 }
 0x17d   : > { %v1560_v27 = vadd.f32 %v1512_v24, %v566_v21  ;;  %v1515_v28 = vadd.f32 %v3593_v25, %v3481_v22 }
 0x17e   : > { %v3482_v29 = vpop.f32.mrb[56].mxu0 }
 0x17f   : > { %1592 = vst [vmem:[#allocation2 + $0xd0] sm:$0xff] %v1560_v27  ;;  %v1561_v30 = vadd.f32 %v1515_v28, %v567_v26  ;;  %v3594_v31 = vpop.f32.mrb[56].mxu1  ;;  %v3483_v32 = vpop.f32.mrb[57].mxu0 }
 0x180   : > { %v3484_v33 = vadd.f32 %v3483_v32, %v3482_v29  ;;  %v3595_v34 = vpop.f32.mrb[57].mxu1  ;;  %v3485_v35 = vpop.f32.mrb[58].mxu0 }
 0x181   : > { %1593 = vst [vmem:[#allocation2 + $0xd8] sm:$0xff] %v1561_v30  ;;  %v3596_v36 = vadd.f32 %v3595_v34, %v3594_v31  ;;  %v3597_v37 = vpop.f32.mrb[58].mxu1  ;;  %v3486_v38 = vpop.f32.mrb[59].mxu0 }
 0x182   : > { %v3487_v40 = vadd.f32 %v3486_v38, %v3485_v35  ;;  %v3598_v41 = vpop.f32.mrb[59].mxu1 }
 0x183   : > { %v1520_v42 = vadd.f32 %v3596_v36, %v3484_v33  ;;  %v3599_v43 = vadd.f32 %v3598_v41, %v3597_v37 }
 0x185   : > { %v1562_v45 = vadd.f32 %v1520_v42, %v568_v39  ;;  %v1523_v46 = vadd.f32 %v3599_v43, %v3487_v40 }
 0x186   : > { %v3488_v47 = vpop.f32.mrb[60].mxu0 }
 0x187   : > { %1594 = vst [vmem:[#allocation2 + $0xe0] sm:$0xff] %v1562_v45  ;;  %v1563_v48 = vadd.f32 %v1523_v46, %v569_v44  ;;  %v3600_v49 = vpop.f32.mrb[60].mxu1  ;;  %v3489_v50 = vpop.f32.mrb[61].mxu0 }
 0x188   : > { %v3490_v51 = vadd.f32 %v3489_v50, %v3488_v47  ;;  %v3601_v52 = vpop.f32.mrb[61].mxu1  ;;  %v3491_v53 = vpop.f32.mrb[62].mxu0 }
 0x189   : > { %1595 = vst [vmem:[#allocation2 + $0xe8] sm:$0xff] %v1563_v48  ;;  %v3602_v54 = vadd.f32 %v3601_v52, %v3600_v49  ;;  %v3603_v55 = vpop.f32.mrb[62].mxu1  ;;  %v3492_v56 = vpop.f32.mrb[63].mxu0 }
 0x18a   : > { %v3493_v58 = vadd.f32 %v3492_v56, %v3491_v53  ;;  %v3604_v59 = vpop.f32.mrb[63].mxu1 }
 0x18b   : > { %v1528_v60 = vadd.f32 %v3602_v54, %v3490_v51  ;;  %v3605_v61 = vadd.f32 %v3604_v59, %v3603_v55 }
 0x18d   : > { %v1564_v63 = vadd.f32 %v1528_v60, %v570_v57  ;;  %v1531_v0 = vadd.f32 %v3605_v61, %v3493_v58 }
 0x18f   : > { %1596 = vst [vmem:[#allocation2 + $0xf0] sm:$0xff] %v1564_v63  ;;  %v1565_v1 = vadd.f32 %v1531_v0, %v571_v62 }
 0x191   : > { %1597 = vst [vmem:[#allocation2 + $0xf8] sm:$0xff] %v1565_v1 }
 0x192 PF: > { %p3285_p13 = scmp.le.s32.totalorder %s4345_s14, 0 }
 0x193   : > { %p1602_p0 = scmp.lt.s32.totalorder (!%p3285_p13), %s4345_s14, 0  ;;  %s1603_s12 = ssub.s32 (!%p3285_p13), 0, %s4345_s14  ;;  %v4214_v2 = vld [vmem:[%s4464_s26 + $0x4] ss:$16 sps:$4 sm:$0xff] (!%p3285_p13)   ;;  %v4217_v3 = vld [vmem:[%s4464_s26 + $0xc] ss:$16 sps:$4 sm:$0xff] (!%p3285_p13)  }
 0x194   : > { %1601 = sbr.rel (%p3285_p13) target bundleno = 796 (0x31c), region = 76  ;;  %s3286_s20 = smin.u32 (!%p3285_p13), %s4345_s14, %s1603_s12  ;;  %2101 = vmatprep.mubr.bf16.mxu0 (!%p3285_p13), %v4214_v2  ;;  %2262 = vmatprep.mubr.bf16.mxu1 (!%p3285_p13), %v4217_v3  ;;  %v4212_v36 = vld [vmem:[%s4464_s26] ss:$16 sps:$4 sm:$0xff] (!%p3285_p13)   ;;  %v4215_v37 = vld [vmem:[%s4464_s26 + $0x8] ss:$16 sps:$4 sm:$0xff] (!%p3285_p13)  }
 0x195   : > { %s1605_s21 = sand.u32 (!%p3285_p13), 1, %s3286_s20   ;;  %v4218_v38 = vld [vmem:[%s4464_s26 + $0x24] ss:$16 sps:$4 sm:$0xff] (!%p3285_p13)   ;;  %v4220_v39 = vld [vmem:[%s4464_s26 + $0x2c] ss:$16 sps:$4 sm:$0xff] (!%p3285_p13)  }
 0x196   : > { %s1606_s23 = ssub.s32 (!%p3285_p13), 0, %s1605_s21  ;;  %v4222_v40 = vld [vmem:[%s4464_s26 + $0x20] ss:$16 sps:$4 sm:$0xff] (!%p3285_p13)   ;;  %v4223_v41 = vld [vmem:[%s4464_s26 + $0x28] ss:$16 sps:$4 sm:$0xff] (!%p3285_p13)  }
 0x197   : > { %v4224_v42 = vld [vmem:[%s4464_s26 + $0x44] ss:$16 sps:$4 sm:$0xff] (!%p3285_p13)   ;;  %v4226_v43 = vld [vmem:[%s4464_s26 + $0x4c] ss:$16 sps:$4 sm:$0xff] (!%p3285_p13)   ;;  %v4228_v44 = vld [vmem:[%s4464_s26 + $0x40] ss:$16 sps:$4 sm:$0xff] (!%p3285_p13)  }
 0x198   : > { %v4229_v45 = vld [vmem:[%s4464_s26 + $0x48] ss:$16 sps:$4 sm:$0xff] (!%p3285_p13)   ;;  %v4230_v46 = vld [vmem:[%s4464_s26 + $0x64] ss:$16 sps:$4 sm:$0xff] (!%p3285_p13)   ;;  %v4232_v47 = vld [vmem:[%s4464_s26 + $0x6c] ss:$16 sps:$4 sm:$0xff] (!%p3285_p13)  }
 0x199   : > { %v4234_v48 = vld [vmem:[%s4464_s26 + $0x60] ss:$16 sps:$4 sm:$0xff] (!%p3285_p13)   ;;  %v4235_v49 = vld [vmem:[%s4464_s26 + $0x68] ss:$16 sps:$4 sm:$0xff] (!%p3285_p13)   ;;  %v4236_v50 = vld [vmem:[%s4464_s26 + $0x84] ss:$16 sps:$4 sm:$0xff] (!%p3285_p13)  }
 0x19a   : > { %v4238_v51 = vld [vmem:[%s4464_s26 + $0x8c] ss:$16 sps:$4 sm:$0xff] (!%p3285_p13)   ;;  %v4240_v52 = vld [vmem:[%s4464_s26 + $0x80] ss:$16 sps:$4 sm:$0xff] (!%p3285_p13)   ;;  %v4241_v53 = vld [vmem:[%s4464_s26 + $0x88] ss:$16 sps:$4 sm:$0xff] (!%p3285_p13)  }
 0x19b   : > { %s4967_s23 = smov (!%p1602_p0, %s1606_s23), %s1605_s21  ;;  %v4242_v54 = vld [vmem:[%s4464_s26 + $0xa4] ss:$16 sps:$4 sm:$0xff]   ;;  %v4244_v55 = vld [vmem:[%s4464_s26 + $0xac] ss:$16 sps:$4 sm:$0xff]   ;;  %v4246_v56 = vld [vmem:[%s4464_s26 + $0xa0] ss:$16 sps:$4 sm:$0xff]  }
 0x19c   : > { %p3288_p1 = scmp.lt.s32.totalorder %s4967_s23, 0  ;;  %s1612_s0 = sadd.s32 2, %s4967_s23  ;;  %v4247_v57 = vld [vmem:[%s4464_s26 + $0xa8] ss:$16 sps:$4 sm:$0xff]   ;;  %v4248_v58 = vld [vmem:[%s4464_s26 + $0xc4] ss:$16 sps:$4 sm:$0xff]  }
 0x19d   : > { %v4250_v59 = vld [vmem:[%s4464_s26 + $0xcc] ss:$16 sps:$4 sm:$0xff]   ;;  %v4252_v60 = vld [vmem:[%s4464_s26 + $0xc0] ss:$16 sps:$4 sm:$0xff]   ;;  %v4253_v61 = vld [vmem:[%s4464_s26 + $0xc8] ss:$16 sps:$4 sm:$0xff]  }
 0x19e   : > { %s4969_s0 = smov (!%p3288_p1, %s1612_s0), %s4967_s23  ;;  %v4254_v62 = vld [vmem:[%s4464_s26 + $0xe4] ss:$16 sps:$4 sm:$0xff]   ;;  %v4256_v63 = vld [vmem:[%s4464_s26 + $0xec] ss:$16 sps:$4 sm:$0xff]   ;;  %v4258_v0 = vld [vmem:[%s4464_s26 + $0xe0] ss:$16 sps:$4 sm:$0xff]  }
 0x19f   : > { %s3289_s25 = sshll.u32 %s4969_s0, 9  ;;  %v4259_v1 = vld [vmem:[%s4464_s26 + $0xe8] ss:$16 sps:$4 sm:$0xff]   ;;  %v4260_v2 = vld [vmem:[%s4464_s26 + $0x104] ss:$16 sps:$4 sm:$0xff]  }
 0x1a0   : > { %s1713_s22 = sshra.s32 %s3289_s25, 4  ;;  %v4262_v3 = vld [vmem:[%s4464_s26 + $0x10c] ss:$16 sps:$4 sm:$0xff]  }
 0x1a1   : > { %s3290_s28 = sshll.u32 %s1713_s22, 3 }
 0x1a2   : > { %s4652_s29 = scalar_lea.vmem [#allocation4], %s3290_s28 }
 0x1a3   : > { %v1725_v4 = vld [vmem:[%s4652_s29 + $0x40] sm:$0xff]  ;;  %v1726_v8 = vld [vmem:[%s4652_s29 + $0x48] sm:$0xff]  ;;  %v1727_v12 = vld [vmem:[%s4652_s29 + $0x50] sm:$0xff] }
 0x1a4   : > { %v1741_v5 = vld [vmem:[%s4652_s29 + $0xc0] sm:$0xff]  ;;  %3606 = vmatprep.subr.bf16.mxu0 %v1725_v4  ;;  %v1742_v9 = vld [vmem:[%s4652_s29 + $0xc8] sm:$0xff]  ;;  %v1743_v13 = vld [vmem:[%s4652_s29 + $0xd0] sm:$0xff] }
 0x1a5   : > { %v1717_v6 = vld [vmem:[%s4652_s29] sm:$0xff]  ;;  %3718 = vmatprep.subr.bf16.mxu1 %v1741_v5  ;;  %v1718_v10 = vld [vmem:[%s4652_s29 + $0x8] sm:$0xff]  ;;  %v1719_v14 = vld [vmem:[%s4652_s29 + $0x10] sm:$0xff] }
 0x1a6   : > { %v1733_v7 = vld [vmem:[%s4652_s29 + $0x80] sm:$0xff]  ;;  %3607 = vmatpush3.bf16.msra.mxu0 %v1717_v6  ;;  %v1734_v11 = vld [vmem:[%s4652_s29 + $0x88] sm:$0xff]  ;;  %v1735_v15 = vld [vmem:[%s4652_s29 + $0x90] sm:$0xff] }
 0x1a7   : > { %3719 = vmatpush3.bf16.msra.mxu1 %v1733_v7  ;;  %3608 = vmatprep.subr.bf16.mxu0 %v1726_v8  ;;  %v1728_v16 = vld [vmem:[%s4652_s29 + $0x58] sm:$0xff]  ;;  %v1729_v20 = vld [vmem:[%s4652_s29 + $0x60] sm:$0xff]  ;;  %v1730_v24 = vld [vmem:[%s4652_s29 + $0x68] sm:$0xff] }
 0x1a8   : > { %3720 = vmatprep.subr.bf16.mxu1 %v1742_v9  ;;  %v1744_v17 = vld [vmem:[%s4652_s29 + $0xd8] sm:$0xff]  ;;  %v1745_v21 = vld [vmem:[%s4652_s29 + $0xe0] sm:$0xff]  ;;  %v1746_v25 = vld [vmem:[%s4652_s29 + $0xe8] sm:$0xff] }
 0x1a9   : > { %v1720_v18 = vld [vmem:[%s4652_s29 + $0x18] sm:$0xff]  ;;  %v1721_v22 = vld [vmem:[%s4652_s29 + $0x20] sm:$0xff]  ;;  %v1722_v26 = vld [vmem:[%s4652_s29 + $0x28] sm:$0xff] }
 0x1aa   : > { %3609 = vmatpush3.bf16.msra.mxu0 %v1718_v10  ;;  %v1736_v19 = vld [vmem:[%s4652_s29 + $0x98] sm:$0xff]  ;;  %v1737_v23 = vld [vmem:[%s4652_s29 + $0xa0] sm:$0xff]  ;;  %v1738_v27 = vld [vmem:[%s4652_s29 + $0xa8] sm:$0xff] }
 0x1ab   : > { %3721 = vmatpush3.bf16.msra.mxu1 %v1734_v11  ;;  %3610 = vmatprep.subr.bf16.mxu0 %v1727_v12  ;;  %v1731_v28 = vld [vmem:[%s4652_s29 + $0x70] sm:$0xff]  ;;  %v1732_v32 = vld [vmem:[%s4652_s29 + $0x78] sm:$0xff] }
 0x1ac   : > { %3722 = vmatprep.subr.bf16.mxu1 %v1743_v13  ;;  %v1747_v29 = vld [vmem:[%s4652_s29 + $0xf0] sm:$0xff]  ;;  %v1748_v33 = vld [vmem:[%s4652_s29 + $0xf8] sm:$0xff] }
 0x1ad   : > { %v1723_v30 = vld [vmem:[%s4652_s29 + $0x30] sm:$0xff]  ;;  %v1724_v34 = vld [vmem:[%s4652_s29 + $0x38] sm:$0xff] }
 0x1ae   : > { %3611 = vmatpush3.bf16.msra.mxu0 %v1719_v14  ;;  %v1739_v31 = vld [vmem:[%s4652_s29 + $0xb0] sm:$0xff]  ;;  %v1740_v35 = vld [vmem:[%s4652_s29 + $0xb8] sm:$0xff] }
 0x1af   : > { %3723 = vmatpush3.bf16.msra.mxu1 %v1735_v15  ;;  %3612 = vmatprep.subr.bf16.mxu0 %v1728_v16  ;;  %v4264_v4 = vld [vmem:[%s4464_s26 + $0x100] ss:$16 sps:$4 sm:$0xff]   ;;  %v4265_v5 = vld [vmem:[%s4464_s26 + $0x108] ss:$16 sps:$4 sm:$0xff]   ;;  %v4266_v6 = vld [vmem:[%s4464_s26 + $0x124] ss:$16 sps:$4 sm:$0xff]  }
 0x1b0   : > { %3724 = vmatprep.subr.bf16.mxu1 %v1744_v17  ;;  %v4268_v7 = vld [vmem:[%s4464_s26 + $0x12c] ss:$16 sps:$4 sm:$0xff]   ;;  %v4270_v8 = vld [vmem:[%s4464_s26 + $0x120] ss:$16 sps:$4 sm:$0xff]   ;;  %v4271_v9 = vld [vmem:[%s4464_s26 + $0x128] ss:$16 sps:$4 sm:$0xff]  }
 0x1b1   : > { %v4272_v10 = vld [vmem:[%s4464_s26 + $0x144] ss:$16 sps:$4 sm:$0xff]   ;;  %v4274_v11 = vld [vmem:[%s4464_s26 + $0x14c] ss:$16 sps:$4 sm:$0xff]   ;;  %v4276_v12 = vld [vmem:[%s4464_s26 + $0x140] ss:$16 sps:$4 sm:$0xff]  }
 0x1b2   : > { %3613 = vmatpush3.bf16.msra.mxu0 %v1720_v18  ;;  %v4277_v13 = vld [vmem:[%s4464_s26 + $0x148] ss:$16 sps:$4 sm:$0xff]   ;;  %v4278_v14 = vld [vmem:[%s4464_s26 + $0x164] ss:$16 sps:$4 sm:$0xff]   ;;  %v4280_v15 = vld [vmem:[%s4464_s26 + $0x16c] ss:$16 sps:$4 sm:$0xff]  }
 0x1b3   : > { %3725 = vmatpush3.bf16.msra.mxu1 %v1736_v19  ;;  %3614 = vmatprep.subr.bf16.mxu0 %v1729_v20  ;;  %v4282_v16 = vld [vmem:[%s4464_s26 + $0x160] ss:$16 sps:$4 sm:$0xff]   ;;  %v4283_v17 = vld [vmem:[%s4464_s26 + $0x168] ss:$16 sps:$4 sm:$0xff]   ;;  %v4284_v18 = vld [vmem:[%s4464_s26 + $0x184] ss:$16 sps:$4 sm:$0xff]  }
 0x1b4   : > { %3726 = vmatprep.subr.bf16.mxu1 %v1745_v21  ;;  %v4286_v19 = vld [vmem:[%s4464_s26 + $0x18c] ss:$16 sps:$4 sm:$0xff]   ;;  %v4288_v20 = vld [vmem:[%s4464_s26 + $0x180] ss:$16 sps:$4 sm:$0xff]   ;;  %v4289_v21 = vld [vmem:[%s4464_s26 + $0x188] ss:$16 sps:$4 sm:$0xff]  }
 0x1b6   : > { %3615 = vmatpush3.bf16.msra.mxu0 %v1721_v22  ;;  %v4290_v22 = vld [vmem:[%s4464_s26 + $0x1a4] ss:$16 sps:$4 sm:$0xff]  }
 0x1b7   : > { %3727 = vmatpush3.bf16.msra.mxu1 %v1737_v23  ;;  %3616 = vmatprep.subr.bf16.mxu0 %v1730_v24  ;;  %v4292_v23 = vld [vmem:[%s4464_s26 + $0x1ac] ss:$16 sps:$4 sm:$0xff]   ;;  %v4294_v24 = vld [vmem:[%s4464_s26 + $0x1a0] ss:$16 sps:$4 sm:$0xff]  }
 0x1b8   : > { %3728 = vmatprep.subr.bf16.mxu1 %v1746_v25  ;;  %v4295_v25 = vld [vmem:[%s4464_s26 + $0x1a8] ss:$16 sps:$4 sm:$0xff]  }
 0x1ba   : > { %3617 = vmatpush3.bf16.msra.mxu0 %v1722_v26  ;;  %v4296_v26 = vld [vmem:[%s4464_s26 + $0x1c4] ss:$16 sps:$4 sm:$0xff]  }
 0x1bb   : > { %3729 = vmatpush3.bf16.msra.mxu1 %v1738_v27  ;;  %3618 = vmatprep.subr.bf16.mxu0 %v1731_v28  ;;  %v4298_v27 = vld [vmem:[%s4464_s26 + $0x1cc] ss:$16 sps:$4 sm:$0xff]   ;;  %v4300_v28 = vld [vmem:[%s4464_s26 + $0x1c0] ss:$16 sps:$4 sm:$0xff]  }
 0x1bc   : > { %3730 = vmatprep.subr.bf16.mxu1 %v1747_v29  ;;  %v4301_v29 = vld [vmem:[%s4464_s26 + $0x1c8] ss:$16 sps:$4 sm:$0xff]  }
 0x1be   : > { %3619 = vmatpush3.bf16.msra.mxu0 %v1723_v30  ;;  %v4302_v30 = vld [vmem:[%s4464_s26 + $0x1e4] ss:$16 sps:$4 sm:$0xff]  }
 0x1bf   : > { %3731 = vmatpush3.bf16.msra.mxu1 %v1739_v31  ;;  %3620 = vmatprep.subr.bf16.mxu0 %v1732_v32  ;;  %v4304_v31 = vld [vmem:[%s4464_s26 + $0x1ec] ss:$16 sps:$4 sm:$0xff]   ;;  %v4306_v32 = vld [vmem:[%s4464_s26 + $0x1e0] ss:$16 sps:$4 sm:$0xff]  }
 0x1c0   : > { %3732 = vmatprep.subr.bf16.mxu1 %v1748_v33  ;;  %v4307_v33 = vld [vmem:[%s4464_s26 + $0x1e8] ss:$16 sps:$4 sm:$0xff]  }
 0x1c2   : > { %3621 = vmatpush3.bf16.msra.mxu0 %v1724_v34 }
 0x1c3   : > { %3733 = vmatpush3.bf16.msra.mxu1 %v1740_v35 }
 0x1c5   : > { %2102 = vmatmul.mubr.bf16.vlgmr.msra.gmra.mrb[0].mxu0 %v4212_v36 }
 0x1c6   : > { %2263 = vmatmul.mubr.bf16.vlgmr.msra.gmra.mrb[0].mxu1 %v4215_v37  ;;  %2109 = vmatprep.mubr.bf16.mxu0 %v4218_v38 }
 0x1c7   : > { %2270 = vmatprep.mubr.bf16.mxu1 %v4220_v39 }
 0x1cd   : > { %2110 = vmatmul.mubr.bf16.gmra.mrb[4].mxu0 %v4222_v40 }
 0x1ce   : > { %2271 = vmatmul.mubr.bf16.gmra.mrb[4].mxu1 %v4223_v41  ;;  %2117 = vmatprep.mubr.bf16.mxu0 %v4224_v42  ;;  %v1617_v42 = vld [vmem:[#allocation2] sm:$0xff] }
 0x1cf   : > { %2278 = vmatprep.mubr.bf16.mxu1 %v4226_v43 }
 0x1d5   : > { %2118 = vmatmul.mubr.bf16.gmra.mrb[8].mxu0 %v4228_v44 }
 0x1d6   : > { %2279 = vmatmul.mubr.bf16.gmra.mrb[8].mxu1 %v4229_v45  ;;  %2125 = vmatprep.mubr.bf16.mxu0 %v4230_v46 }
 0x1d7   : > { %2286 = vmatprep.mubr.bf16.mxu1 %v4232_v47 }
 0x1dd   : > { %2126 = vmatmul.mubr.bf16.gmra.mrb[12].mxu0 %v4234_v48  ;;  %v1618_v48 = vld [vmem:[#allocation2 + $0x8] sm:$0xff] }
 0x1de   : > { %2287 = vmatmul.mubr.bf16.gmra.mrb[12].mxu1 %v4235_v49  ;;  %2133 = vmatprep.mubr.bf16.mxu0 %v4236_v50 }
 0x1df   : > { %2294 = vmatprep.mubr.bf16.mxu1 %v4238_v51 }
 0x1e5   : > { %2134 = vmatmul.mubr.bf16.gmra.mrb[16].mxu0 %v4240_v52 }
 0x1e6   : > { %2295 = vmatmul.mubr.bf16.gmra.mrb[16].mxu1 %v4241_v53  ;;  %2141 = vmatprep.mubr.bf16.mxu0 %v4242_v54 }
 0x1e7   : > { %2302 = vmatprep.mubr.bf16.mxu1 %v4244_v55 }
 0x1ed   : > { %2142 = vmatmul.mubr.bf16.gmra.mrb[20].mxu0 %v4246_v56 }
 0x1ee   : > { %2303 = vmatmul.mubr.bf16.gmra.mrb[20].mxu1 %v4247_v57  ;;  %2149 = vmatprep.mubr.bf16.mxu0 %v4248_v58 }
 0x1ef   : > { %2310 = vmatprep.mubr.bf16.mxu1 %v4250_v59 }
 0x1f5   : > { %2150 = vmatmul.mubr.bf16.gmra.mrb[24].mxu0 %v4252_v60  ;;  %v1619_v60 = vld [vmem:[#allocation2 + $0x10] sm:$0xff] }
 0x1f6   : > { %2311 = vmatmul.mubr.bf16.gmra.mrb[24].mxu1 %v4253_v61  ;;  %2157 = vmatprep.mubr.bf16.mxu0 %v4254_v62 }
 0x1f7   : > { %2318 = vmatprep.mubr.bf16.mxu1 %v4256_v63 }
 0x1fd   : > { %2158 = vmatmul.mubr.bf16.gmra.mrb[28].mxu0 %v4258_v0 }
 0x1fe   : > { %2319 = vmatmul.mubr.bf16.gmra.mrb[28].mxu1 %v4259_v1  ;;  %2165 = vmatprep.mubr.bf16.mxu0 %v4260_v2  ;;  %v1620_v2 = vld [vmem:[#allocation2 + $0x18] sm:$0xff] }
 0x1ff   : > { %2326 = vmatprep.mubr.bf16.mxu1 %v4262_v3 }
 0x205   : > { %2166 = vmatmul.mubr.bf16.gmra.mrb[32].mxu0 %v4264_v4 }
 0x206   : > { %2327 = vmatmul.mubr.bf16.gmra.mrb[32].mxu1 %v4265_v5  ;;  %2173 = vmatprep.mubr.bf16.mxu0 %v4266_v6 }
 0x207   : > { %2334 = vmatprep.mubr.bf16.mxu1 %v4268_v7 }
 0x20d   : > { %2174 = vmatmul.mubr.bf16.gmra.mrb[36].mxu0 %v4270_v8 }
 0x20e   : > { %2335 = vmatmul.mubr.bf16.gmra.mrb[36].mxu1 %v4271_v9  ;;  %2181 = vmatprep.mubr.bf16.mxu0 %v4272_v10 }
 0x20f   : > { %2342 = vmatprep.mubr.bf16.mxu1 %v4274_v11 }
 0x215   : > { %2182 = vmatmul.mubr.bf16.gmra.mrb[40].mxu0 %v4276_v12 }
 0x216   : > { %2343 = vmatmul.mubr.bf16.gmra.mrb[40].mxu1 %v4277_v13  ;;  %2189 = vmatprep.mubr.bf16.mxu0 %v4278_v14  ;;  %v1621_v14 = vld [vmem:[#allocation2 + $0x20] sm:$0xff] }
 0x217   : > { %2350 = vmatprep.mubr.bf16.mxu1 %v4280_v15 }
 0x21d   : > { %2190 = vmatmul.mubr.bf16.gmra.mrb[44].mxu0 %v4282_v16 }
 0x21e   : > { %2351 = vmatmul.mubr.bf16.gmra.mrb[44].mxu1 %v4283_v17  ;;  %2197 = vmatprep.mubr.bf16.mxu0 %v4284_v18 }
 0x21f   : > { %2358 = vmatprep.mubr.bf16.mxu1 %v4286_v19 }
 0x225   : > { %2198 = vmatmul.mubr.bf16.gmra.mrb[48].mxu0 %v4288_v20  ;;  %v1622_v20 = vld [vmem:[#allocation2 + $0x28] sm:$0xff] }
 0x226   : > { %2359 = vmatmul.mubr.bf16.gmra.mrb[48].mxu1 %v4289_v21  ;;  %2205 = vmatprep.mubr.bf16.mxu0 %v4290_v22 }
 0x227   : > { %2366 = vmatprep.mubr.bf16.mxu1 %v4292_v23 }
 0x22d   : > { %2206 = vmatmul.mubr.bf16.gmra.mrb[52].mxu0 %v4294_v24 }
 0x22e   : > { %2367 = vmatmul.mubr.bf16.gmra.mrb[52].mxu1 %v4295_v25  ;;  %2213 = vmatprep.mubr.bf16.mxu0 %v4296_v26 }
 0x22f   : > { %2374 = vmatprep.mubr.bf16.mxu1 %v4298_v27 }
 0x235   : > { %2214 = vmatmul.mubr.bf16.gmra.mrb[56].mxu0 %v4300_v28 }
 0x236   : > { %2375 = vmatmul.mubr.bf16.gmra.mrb[56].mxu1 %v4301_v29  ;;  %2221 = vmatprep.mubr.bf16.mxu0 %v4302_v30 }
 0x237   : > { %2382 = vmatprep.mubr.bf16.mxu1 %v4304_v31 }
 0x23d   : > { %2222 = vmatmul.mubr.bf16.gmra.mrb[60].mxu0 %v4306_v32  ;;  %v1623_v32 = vld [vmem:[#allocation2 + $0x30] sm:$0xff] }
 0x23e   : > { %2383 = vmatmul.mubr.bf16.gmra.mrb[60].mxu1 %v4307_v33 }
 0x298   : > { %v3622_v34 = vpop.f32.mrb[0].mxu0 }
 0x299   : > { %v3734_v35 = vpop.f32.mrb[0].mxu1  ;;  %v3623_v36 = vpop.f32.mrb[1].mxu0 }
 0x29a   : > { %v3735_v37 = vpop.f32.mrb[1].mxu1  ;;  %v3624_v38 = vadd.f32 %v3623_v36, %v3622_v34  ;;  %v3625_v40 = vpop.f32.mrb[2].mxu0 }
 0x29b   : > { %v3736_v39 = vadd.f32 %v3735_v37, %v3734_v35  ;;  %v3737_v41 = vpop.f32.mrb[2].mxu1  ;;  %v3626_v43 = vpop.f32.mrb[3].mxu0 }
 0x29c   : > { %v3738_v44 = vpop.f32.mrb[3].mxu1  ;;  %v3627_v46 = vadd.f32 %v3626_v43, %v3625_v40 }
 0x29d   : > { %v2265_v45 = vadd.f32 %v3736_v39, %v3624_v38  ;;  %v3739_v47 = vadd.f32 %v3738_v44, %v3737_v41  ;;  %v1624_v38 = vld [vmem:[#allocation2 + $0x38] sm:$0xff] }
 0x29f   : > { %v2391_v49 = vadd.f32 %v2265_v45, %v1617_v42  ;;  %v2268_v50 = vadd.f32 %v3739_v47, %v3627_v46 }
 0x2a0   : > { %v3628_v52 = vpop.f32.mrb[4].mxu0 }
 0x2a1   : > { %2423 = vst [vmem:[#allocation2] sm:$0xff] %v2391_v49  ;;  %v2392_v51 = vadd.f32 %v2268_v50, %v1618_v48  ;;  %v3740_v53 = vpop.f32.mrb[4].mxu1  ;;  %v3629_v54 = vpop.f32.mrb[5].mxu0  ;;  %v1625_v50 = vld [vmem:[#allocation2 + $0x40] sm:$0xff] }
 0x2a2   : > { %v3741_v55 = vpop.f32.mrb[5].mxu1  ;;  %v3630_v56 = vadd.f32 %v3629_v54, %v3628_v52  ;;  %v3631_v58 = vpop.f32.mrb[6].mxu0 }
 0x2a3   : > { %2424 = vst [vmem:[#allocation2 + $0x8] sm:$0xff] %v2392_v51  ;;  %v3742_v57 = vadd.f32 %v3741_v55, %v3740_v53  ;;  %v3743_v59 = vpop.f32.mrb[6].mxu1  ;;  %v3632_v61 = vpop.f32.mrb[7].mxu0 }
 0x2a4   : > { %v3744_v62 = vpop.f32.mrb[7].mxu1  ;;  %v3633_v0 = vadd.f32 %v3632_v61, %v3631_v58 }
 0x2a5   : > { %v2273_v63 = vadd.f32 %v3742_v57, %v3630_v56  ;;  %v3745_v1 = vadd.f32 %v3744_v62, %v3743_v59  ;;  %v1626_v56 = vld [vmem:[#allocation2 + $0x48] sm:$0xff] }
 0x2a7   : > { %v2393_v3 = vadd.f32 %v2273_v63, %v1619_v60  ;;  %v2276_v4 = vadd.f32 %v3745_v1, %v3633_v0 }
 0x2a8   : > { %v3634_v6 = vpop.f32.mrb[8].mxu0 }
 0x2a9   : > { %2425 = vst [vmem:[#allocation2 + $0x10] sm:$0xff] %v2393_v3  ;;  %v2394_v5 = vadd.f32 %v2276_v4, %v1620_v2  ;;  %v3746_v7 = vpop.f32.mrb[8].mxu1  ;;  %v3635_v8 = vpop.f32.mrb[9].mxu0  ;;  %v1627_v4 = vld [vmem:[#allocation2 + $0x50] sm:$0xff] }
 0x2aa   : > { %v3747_v9 = vpop.f32.mrb[9].mxu1  ;;  %v3636_v10 = vadd.f32 %v3635_v8, %v3634_v6  ;;  %v3637_v12 = vpop.f32.mrb[10].mxu0 }
 0x2ab   : > { %2426 = vst [vmem:[#allocation2 + $0x18] sm:$0xff] %v2394_v5  ;;  %v3748_v11 = vadd.f32 %v3747_v9, %v3746_v7  ;;  %v3749_v13 = vpop.f32.mrb[10].mxu1  ;;  %v3638_v15 = vpop.f32.mrb[11].mxu0 }
 0x2ac   : > { %v3750_v16 = vpop.f32.mrb[11].mxu1  ;;  %v3639_v18 = vadd.f32 %v3638_v15, %v3637_v12 }
 0x2ad   : > { %v2281_v17 = vadd.f32 %v3748_v11, %v3636_v10  ;;  %v3751_v19 = vadd.f32 %v3750_v16, %v3749_v13  ;;  %v1628_v10 = vld [vmem:[#allocation2 + $0x58] sm:$0xff] }
 0x2af   : > { %v2395_v21 = vadd.f32 %v2281_v17, %v1621_v14  ;;  %v2284_v22 = vadd.f32 %v3751_v19, %v3639_v18 }
 0x2b0   : > { %v3640_v24 = vpop.f32.mrb[12].mxu0 }
 0x2b1   : > { %2427 = vst [vmem:[#allocation2 + $0x20] sm:$0xff] %v2395_v21  ;;  %v2396_v23 = vadd.f32 %v2284_v22, %v1622_v20  ;;  %v3752_v25 = vpop.f32.mrb[12].mxu1  ;;  %v3641_v26 = vpop.f32.mrb[13].mxu0  ;;  %v1629_v22 = vld [vmem:[#allocation2 + $0x60] sm:$0xff] }
 0x2b2   : > { %v3753_v27 = vpop.f32.mrb[13].mxu1  ;;  %v3642_v28 = vadd.f32 %v3641_v26, %v3640_v24  ;;  %v3643_v30 = vpop.f32.mrb[14].mxu0 }
 0x2b3   : > { %2428 = vst [vmem:[#allocation2 + $0x28] sm:$0xff] %v2396_v23  ;;  %v3754_v29 = vadd.f32 %v3753_v27, %v3752_v25  ;;  %v3755_v31 = vpop.f32.mrb[14].mxu1  ;;  %v3644_v33 = vpop.f32.mrb[15].mxu0 }
 0x2b4   : > { %v3756_v34 = vpop.f32.mrb[15].mxu1  ;;  %v3645_v36 = vadd.f32 %v3644_v33, %v3643_v30 }
 0x2b5   : > { %v2289_v35 = vadd.f32 %v3754_v29, %v3642_v28  ;;  %v3757_v37 = vadd.f32 %v3756_v34, %v3755_v31  ;;  %v1630_v28 = vld [vmem:[#allocation2 + $0x68] sm:$0xff] }
 0x2b7   : > { %v2397_v39 = vadd.f32 %v2289_v35, %v1623_v32  ;;  %v2292_v40 = vadd.f32 %v3757_v37, %v3645_v36 }
 0x2b8   : > { %v3646_v42 = vpop.f32.mrb[16].mxu0 }
 0x2b9   : > { %2429 = vst [vmem:[#allocation2 + $0x30] sm:$0xff] %v2397_v39  ;;  %v2398_v41 = vadd.f32 %v2292_v40, %v1624_v38  ;;  %v3758_v43 = vpop.f32.mrb[16].mxu1  ;;  %v3647_v44 = vpop.f32.mrb[17].mxu0  ;;  %v1631_v40 = vld [vmem:[#allocation2 + $0x70] sm:$0xff] }
 0x2ba   : > { %v3759_v45 = vpop.f32.mrb[17].mxu1  ;;  %v3648_v46 = vadd.f32 %v3647_v44, %v3646_v42  ;;  %v3649_v48 = vpop.f32.mrb[18].mxu0 }
 0x2bb   : > { %2430 = vst [vmem:[#allocation2 + $0x38] sm:$0xff] %v2398_v41  ;;  %v3760_v47 = vadd.f32 %v3759_v45, %v3758_v43  ;;  %v3761_v49 = vpop.f32.mrb[18].mxu1  ;;  %v3650_v51 = vpop.f32.mrb[19].mxu0 }
 0x2bc   : > { %v3762_v52 = vpop.f32.mrb[19].mxu1  ;;  %v3651_v54 = vadd.f32 %v3650_v51, %v3649_v48 }
 0x2bd   : > { %v2297_v53 = vadd.f32 %v3760_v47, %v3648_v46  ;;  %v3763_v55 = vadd.f32 %v3762_v52, %v3761_v49  ;;  %v1632_v46 = vld [vmem:[#allocation2 + $0x78] sm:$0xff] }
 0x2bf   : > { %v2399_v57 = vadd.f32 %v2297_v53, %v1625_v50  ;;  %v2300_v58 = vadd.f32 %v3763_v55, %v3651_v54 }
 0x2c0   : > { %v3652_v60 = vpop.f32.mrb[20].mxu0 }
 0x2c1   : > { %2431 = vst [vmem:[#allocation2 + $0x40] sm:$0xff] %v2399_v57  ;;  %v2400_v59 = vadd.f32 %v2300_v58, %v1626_v56  ;;  %v3764_v61 = vpop.f32.mrb[20].mxu1  ;;  %v3653_v62 = vpop.f32.mrb[21].mxu0  ;;  %v1633_v58 = vld [vmem:[#allocation2 + $0x80] sm:$0xff] }
 0x2c2   : > { %v3765_v63 = vpop.f32.mrb[21].mxu1  ;;  %v3654_v0 = vadd.f32 %v3653_v62, %v3652_v60  ;;  %v3655_v2 = vpop.f32.mrb[22].mxu0 }
 0x2c3   : > { %2432 = vst [vmem:[#allocation2 + $0x48] sm:$0xff] %v2400_v59  ;;  %v3766_v1 = vadd.f32 %v3765_v63, %v3764_v61  ;;  %v3767_v3 = vpop.f32.mrb[22].mxu1  ;;  %v3656_v5 = vpop.f32.mrb[23].mxu0 }
 0x2c4   : > { %v3768_v6 = vpop.f32.mrb[23].mxu1  ;;  %v3657_v8 = vadd.f32 %v3656_v5, %v3655_v2 }
 0x2c5   : > { %v2305_v7 = vadd.f32 %v3766_v1, %v3654_v0  ;;  %v3769_v9 = vadd.f32 %v3768_v6, %v3767_v3  ;;  %v1634_v0 = vld [vmem:[#allocation2 + $0x88] sm:$0xff] }
 0x2c7   : > { %v2401_v11 = vadd.f32 %v2305_v7, %v1627_v4  ;;  %v2308_v12 = vadd.f32 %v3769_v9, %v3657_v8 }
 0x2c8   : > { %v3658_v14 = vpop.f32.mrb[24].mxu0 }
 0x2c9   : > { %2433 = vst [vmem:[#allocation2 + $0x50] sm:$0xff] %v2401_v11  ;;  %v2402_v13 = vadd.f32 %v2308_v12, %v1628_v10  ;;  %v3770_v15 = vpop.f32.mrb[24].mxu1  ;;  %v3659_v16 = vpop.f32.mrb[25].mxu0  ;;  %v1635_v12 = vld [vmem:[#allocation2 + $0x90] sm:$0xff] }
 0x2ca   : > { %v3771_v17 = vpop.f32.mrb[25].mxu1  ;;  %v3660_v18 = vadd.f32 %v3659_v16, %v3658_v14  ;;  %v3661_v20 = vpop.f32.mrb[26].mxu0 }
 0x2cb   : > { %2434 = vst [vmem:[#allocation2 + $0x58] sm:$0xff] %v2402_v13  ;;  %v3772_v19 = vadd.f32 %v3771_v17, %v3770_v15  ;;  %v3773_v21 = vpop.f32.mrb[26].mxu1  ;;  %v3662_v23 = vpop.f32.mrb[27].mxu0 }
 0x2cc   : > { %v3774_v24 = vpop.f32.mrb[27].mxu1  ;;  %v3663_v26 = vadd.f32 %v3662_v23, %v3661_v20 }
 0x2cd   : > { %v2313_v25 = vadd.f32 %v3772_v19, %v3660_v18  ;;  %v3775_v27 = vadd.f32 %v3774_v24, %v3773_v21  ;;  %v1636_v18 = vld [vmem:[#allocation2 + $0x98] sm:$0xff] }
 0x2cf   : > { %v2403_v29 = vadd.f32 %v2313_v25, %v1629_v22  ;;  %v2316_v30 = vadd.f32 %v3775_v27, %v3663_v26 }
 0x2d0   : > { %v3664_v32 = vpop.f32.mrb[28].mxu0 }
 0x2d1   : > { %2435 = vst [vmem:[#allocation2 + $0x60] sm:$0xff] %v2403_v29  ;;  %v2404_v31 = vadd.f32 %v2316_v30, %v1630_v28  ;;  %v3776_v33 = vpop.f32.mrb[28].mxu1  ;;  %v3665_v34 = vpop.f32.mrb[29].mxu0  ;;  %v1637_v30 = vld [vmem:[#allocation2 + $0xa0] sm:$0xff] }
 0x2d2   : > { %v3777_v35 = vpop.f32.mrb[29].mxu1  ;;  %v3666_v36 = vadd.f32 %v3665_v34, %v3664_v32  ;;  %v3667_v38 = vpop.f32.mrb[30].mxu0 }
 0x2d3   : > { %2436 = vst [vmem:[#allocation2 + $0x68] sm:$0xff] %v2404_v31  ;;  %v3778_v37 = vadd.f32 %v3777_v35, %v3776_v33  ;;  %v3779_v39 = vpop.f32.mrb[30].mxu1  ;;  %v3668_v41 = vpop.f32.mrb[31].mxu0 }
 0x2d4   : > { %v3780_v42 = vpop.f32.mrb[31].mxu1  ;;  %v3669_v44 = vadd.f32 %v3668_v41, %v3667_v38 }
 0x2d5   : > { %v2321_v43 = vadd.f32 %v3778_v37, %v3666_v36  ;;  %v3781_v45 = vadd.f32 %v3780_v42, %v3779_v39  ;;  %v1638_v36 = vld [vmem:[#allocation2 + $0xa8] sm:$0xff] }
 0x2d7   : > { %v2405_v47 = vadd.f32 %v2321_v43, %v1631_v40  ;;  %v2324_v48 = vadd.f32 %v3781_v45, %v3669_v44 }
 0x2d8   : > { %v3670_v50 = vpop.f32.mrb[32].mxu0 }
 0x2d9   : > { %2437 = vst [vmem:[#allocation2 + $0x70] sm:$0xff] %v2405_v47  ;;  %v2406_v49 = vadd.f32 %v2324_v48, %v1632_v46  ;;  %v3782_v51 = vpop.f32.mrb[32].mxu1  ;;  %v3671_v52 = vpop.f32.mrb[33].mxu0  ;;  %v1639_v48 = vld [vmem:[#allocation2 + $0xb0] sm:$0xff] }
 0x2da   : > { %v3783_v53 = vpop.f32.mrb[33].mxu1  ;;  %v3672_v54 = vadd.f32 %v3671_v52, %v3670_v50  ;;  %v3673_v56 = vpop.f32.mrb[34].mxu0 }
 0x2db   : > { %2438 = vst [vmem:[#allocation2 + $0x78] sm:$0xff] %v2406_v49  ;;  %v3784_v55 = vadd.f32 %v3783_v53, %v3782_v51  ;;  %v3785_v57 = vpop.f32.mrb[34].mxu1  ;;  %v3674_v59 = vpop.f32.mrb[35].mxu0 }
 0x2dc   : > { %v3786_v60 = vpop.f32.mrb[35].mxu1  ;;  %v3675_v62 = vadd.f32 %v3674_v59, %v3673_v56 }
 0x2dd   : > { %v2329_v61 = vadd.f32 %v3784_v55, %v3672_v54  ;;  %v3787_v63 = vadd.f32 %v3786_v60, %v3785_v57  ;;  %v1640_v54 = vld [vmem:[#allocation2 + $0xb8] sm:$0xff] }
 0x2df   : > { %v2407_v1 = vadd.f32 %v2329_v61, %v1633_v58  ;;  %v2332_v2 = vadd.f32 %v3787_v63, %v3675_v62 }
 0x2e0   : > { %v3676_v4 = vpop.f32.mrb[36].mxu0 }
 0x2e1   : > { %2439 = vst [vmem:[#allocation2 + $0x80] sm:$0xff] %v2407_v1  ;;  %v2408_v3 = vadd.f32 %v2332_v2, %v1634_v0  ;;  %v3788_v5 = vpop.f32.mrb[36].mxu1  ;;  %v3677_v6 = vpop.f32.mrb[37].mxu0  ;;  %v1641_v2 = vld [vmem:[#allocation2 + $0xc0] sm:$0xff] }
 0x2e2   : > { %v3789_v7 = vpop.f32.mrb[37].mxu1  ;;  %v3678_v8 = vadd.f32 %v3677_v6, %v3676_v4  ;;  %v3679_v10 = vpop.f32.mrb[38].mxu0 }
 0x2e3   : > { %2440 = vst [vmem:[#allocation2 + $0x88] sm:$0xff] %v2408_v3  ;;  %v3790_v9 = vadd.f32 %v3789_v7, %v3788_v5  ;;  %v3791_v11 = vpop.f32.mrb[38].mxu1  ;;  %v3680_v13 = vpop.f32.mrb[39].mxu0 }
 0x2e4   : > { %v3792_v14 = vpop.f32.mrb[39].mxu1  ;;  %v3681_v16 = vadd.f32 %v3680_v13, %v3679_v10 }
 0x2e5   : > { %v2337_v15 = vadd.f32 %v3790_v9, %v3678_v8  ;;  %v3793_v17 = vadd.f32 %v3792_v14, %v3791_v11  ;;  %v1642_v8 = vld [vmem:[#allocation2 + $0xc8] sm:$0xff] }
 0x2e7   : > { %v2409_v19 = vadd.f32 %v2337_v15, %v1635_v12  ;;  %v2340_v20 = vadd.f32 %v3793_v17, %v3681_v16 }
 0x2e8   : > { %v3682_v22 = vpop.f32.mrb[40].mxu0 }
 0x2e9   : > { %2441 = vst [vmem:[#allocation2 + $0x90] sm:$0xff] %v2409_v19  ;;  %v2410_v21 = vadd.f32 %v2340_v20, %v1636_v18  ;;  %v3794_v23 = vpop.f32.mrb[40].mxu1  ;;  %v3683_v24 = vpop.f32.mrb[41].mxu0  ;;  %v1643_v20 = vld [vmem:[#allocation2 + $0xd0] sm:$0xff] }
 0x2ea   : > { %v3795_v25 = vpop.f32.mrb[41].mxu1  ;;  %v3684_v26 = vadd.f32 %v3683_v24, %v3682_v22  ;;  %v3685_v28 = vpop.f32.mrb[42].mxu0 }
 0x2eb   : > { %2442 = vst [vmem:[#allocation2 + $0x98] sm:$0xff] %v2410_v21  ;;  %v3796_v27 = vadd.f32 %v3795_v25, %v3794_v23  ;;  %v3797_v29 = vpop.f32.mrb[42].mxu1  ;;  %v3686_v31 = vpop.f32.mrb[43].mxu0 }
 0x2ec   : > { %v3798_v32 = vpop.f32.mrb[43].mxu1  ;;  %v3687_v34 = vadd.f32 %v3686_v31, %v3685_v28 }
 0x2ed   : > { %v2345_v33 = vadd.f32 %v3796_v27, %v3684_v26  ;;  %v3799_v35 = vadd.f32 %v3798_v32, %v3797_v29  ;;  %v1644_v26 = vld [vmem:[#allocation2 + $0xd8] sm:$0xff] }
 0x2ef   : > { %v2411_v37 = vadd.f32 %v2345_v33, %v1637_v30  ;;  %v2348_v38 = vadd.f32 %v3799_v35, %v3687_v34 }
 0x2f0   : > { %v3688_v40 = vpop.f32.mrb[44].mxu0 }
 0x2f1   : > { %2443 = vst [vmem:[#allocation2 + $0xa0] sm:$0xff] %v2411_v37  ;;  %v2412_v39 = vadd.f32 %v2348_v38, %v1638_v36  ;;  %v3800_v41 = vpop.f32.mrb[44].mxu1  ;;  %v3689_v42 = vpop.f32.mrb[45].mxu0  ;;  %v1645_v38 = vld [vmem:[#allocation2 + $0xe0] sm:$0xff] }
 0x2f2   : > { %v3801_v43 = vpop.f32.mrb[45].mxu1  ;;  %v3690_v44 = vadd.f32 %v3689_v42, %v3688_v40  ;;  %v3691_v46 = vpop.f32.mrb[46].mxu0 }
 0x2f3   : > { %2444 = vst [vmem:[#allocation2 + $0xa8] sm:$0xff] %v2412_v39  ;;  %v3802_v45 = vadd.f32 %v3801_v43, %v3800_v41  ;;  %v3803_v47 = vpop.f32.mrb[46].mxu1  ;;  %v3692_v49 = vpop.f32.mrb[47].mxu0 }
 0x2f4   : > { %v3804_v50 = vpop.f32.mrb[47].mxu1  ;;  %v3693_v52 = vadd.f32 %v3692_v49, %v3691_v46 }
 0x2f5   : > { %v2353_v51 = vadd.f32 %v3802_v45, %v3690_v44  ;;  %v3805_v53 = vadd.f32 %v3804_v50, %v3803_v47  ;;  %v1646_v44 = vld [vmem:[#allocation2 + $0xe8] sm:$0xff] }
 0x2f7   : > { %v2413_v55 = vadd.f32 %v2353_v51, %v1639_v48  ;;  %v2356_v56 = vadd.f32 %v3805_v53, %v3693_v52 }
 0x2f8   : > { %v3694_v58 = vpop.f32.mrb[48].mxu0 }
 0x2f9   : > { %2445 = vst [vmem:[#allocation2 + $0xb0] sm:$0xff] %v2413_v55  ;;  %v2414_v57 = vadd.f32 %v2356_v56, %v1640_v54  ;;  %v3806_v59 = vpop.f32.mrb[48].mxu1  ;;  %v3695_v60 = vpop.f32.mrb[49].mxu0  ;;  %v1647_v56 = vld [vmem:[#allocation2 + $0xf0] sm:$0xff] }
 0x2fa   : > { %v3807_v61 = vpop.f32.mrb[49].mxu1  ;;  %v3696_v62 = vadd.f32 %v3695_v60, %v3694_v58  ;;  %v3697_v0 = vpop.f32.mrb[50].mxu0 }
 0x2fb   : > { %2446 = vst [vmem:[#allocation2 + $0xb8] sm:$0xff] %v2414_v57  ;;  %v3808_v63 = vadd.f32 %v3807_v61, %v3806_v59  ;;  %v3809_v1 = vpop.f32.mrb[50].mxu1  ;;  %v3698_v3 = vpop.f32.mrb[51].mxu0 }
 0x2fc   : > { %v3810_v4 = vpop.f32.mrb[51].mxu1  ;;  %v3699_v6 = vadd.f32 %v3698_v3, %v3697_v0 }
 0x2fd   : > { %v2361_v5 = vadd.f32 %v3808_v63, %v3696_v62  ;;  %v3811_v7 = vadd.f32 %v3810_v4, %v3809_v1  ;;  %v1648_v62 = vld [vmem:[#allocation2 + $0xf8] sm:$0xff] }
 0x2ff   : > { %v2415_v9 = vadd.f32 %v2361_v5, %v1641_v2  ;;  %v2364_v10 = vadd.f32 %v3811_v7, %v3699_v6 }
 0x300   : > { %v3700_v12 = vpop.f32.mrb[52].mxu0 }
 0x301   : > { %2447 = vst [vmem:[#allocation2 + $0xc0] sm:$0xff] %v2415_v9  ;;  %v2416_v11 = vadd.f32 %v2364_v10, %v1642_v8  ;;  %v3812_v13 = vpop.f32.mrb[52].mxu1  ;;  %v3701_v14 = vpop.f32.mrb[53].mxu0 }
 0x302   : > { %v3813_v15 = vpop.f32.mrb[53].mxu1  ;;  %v3702_v16 = vadd.f32 %v3701_v14, %v3700_v12  ;;  %v3703_v18 = vpop.f32.mrb[54].mxu0 }
 0x303   : > { %2448 = vst [vmem:[#allocation2 + $0xc8] sm:$0xff] %v2416_v11  ;;  %v3814_v17 = vadd.f32 %v3813_v15, %v3812_v13  ;;  %v3815_v19 = vpop.f32.mrb[54].mxu1  ;;  %v3704_v21 = vpop.f32.mrb[55].mxu0 }
 0x304   : > { %v3816_v22 = vpop.f32.mrb[55].mxu1  ;;  %v3705_v24 = vadd.f32 %v3704_v21, %v3703_v18 }
 0x305   : > { %v2369_v23 = vadd.f32 %v3814_v17, %v3702_v16  ;;  %v3817_v25 = vadd.f32 %v3816_v22, %v3815_v19 }
 0x307   : > { %v2417_v27 = vadd.f32 %v2369_v23, %v1643_v20  ;;  %v2372_v28 = vadd.f32 %v3817_v25, %v3705_v24 }
 0x308   : > { %v3706_v30 = vpop.f32.mrb[56].mxu0 }
 0x309   : > { %2449 = vst [vmem:[#allocation2 + $0xd0] sm:$0xff] %v2417_v27  ;;  %v2418_v29 = vadd.f32 %v2372_v28, %v1644_v26  ;;  %v3818_v31 = vpop.f32.mrb[56].mxu1  ;;  %v3707_v32 = vpop.f32.mrb[57].mxu0 }
 0x30a   : > { %v3819_v33 = vpop.f32.mrb[57].mxu1  ;;  %v3708_v34 = vadd.f32 %v3707_v32, %v3706_v30  ;;  %v3709_v36 = vpop.f32.mrb[58].mxu0 }
 0x30b   : > { %2450 = vst [vmem:[#allocation2 + $0xd8] sm:$0xff] %v2418_v29  ;;  %v3820_v35 = vadd.f32 %v3819_v33, %v3818_v31  ;;  %v3821_v37 = vpop.f32.mrb[58].mxu1  ;;  %v3710_v39 = vpop.f32.mrb[59].mxu0 }
 0x30c   : > { %v3822_v40 = vpop.f32.mrb[59].mxu1  ;;  %v3711_v42 = vadd.f32 %v3710_v39, %v3709_v36 }
 0x30d   : > { %v2377_v41 = vadd.f32 %v3820_v35, %v3708_v34  ;;  %v3823_v43 = vadd.f32 %v3822_v40, %v3821_v37 }
 0x30f   : > { %v2419_v45 = vadd.f32 %v2377_v41, %v1645_v38  ;;  %v2380_v46 = vadd.f32 %v3823_v43, %v3711_v42 }
 0x310   : > { %v3712_v48 = vpop.f32.mrb[60].mxu0 }
 0x311   : > { %2451 = vst [vmem:[#allocation2 + $0xe0] sm:$0xff] %v2419_v45  ;;  %v2420_v47 = vadd.f32 %v2380_v46, %v1646_v44  ;;  %v3824_v49 = vpop.f32.mrb[60].mxu1  ;;  %v3713_v50 = vpop.f32.mrb[61].mxu0 }
 0x312   : > { %v3825_v51 = vpop.f32.mrb[61].mxu1  ;;  %v3714_v52 = vadd.f32 %v3713_v50, %v3712_v48  ;;  %v3715_v54 = vpop.f32.mrb[62].mxu0 }
 0x313   : > { %2452 = vst [vmem:[#allocation2 + $0xe8] sm:$0xff] %v2420_v47  ;;  %v3826_v53 = vadd.f32 %v3825_v51, %v3824_v49  ;;  %v3827_v55 = vpop.f32.mrb[62].mxu1  ;;  %v3716_v57 = vpop.f32.mrb[63].mxu0 }
 0x314   : > { %v3828_v58 = vpop.f32.mrb[63].mxu1  ;;  %v3717_v60 = vadd.f32 %v3716_v57, %v3715_v54 }
 0x315   : > { %v2385_v59 = vadd.f32 %v3826_v53, %v3714_v52  ;;  %v3829_v61 = vadd.f32 %v3828_v58, %v3827_v55 }
 0x317   : > { %v2421_v63 = vadd.f32 %v2385_v59, %v1647_v56  ;;  %v2388_v0 = vadd.f32 %v3829_v61, %v3717_v60 }
 0x319   : > { %2453 = vst [vmem:[#allocation2 + $0xf0] sm:$0xff] %v2421_v63  ;;  %v2422_v1 = vadd.f32 %v2388_v0, %v1648_v62 }
 0x31b   : > { %2454 = vst [vmem:[#allocation2 + $0xf8] sm:$0xff] %v2422_v1 }
 0x31c PF: > { %v4308_v2 = vld [vmem:[%s4479_s24] sm:$0xff]   ;;  %v4309_v3 = vld [vmem:[%s4479_s24 + $0x8] sm:$0xff]   ;;  %v4310_v4 = vld [vmem:[%s4479_s24 + $0x10] sm:$0xff]   ;;  %s4951_s30 = scalar_lea.vmem %s4943_s5, %s4468_s27  ;;  %p3364_p2 = scmp.ge.s32.totalorder %s4345_s14, 2 }
 0x31d   : > { %3898 = vmatprep.subr.bf16.mxu0 %v4308_v2  ;;  %4022 = vmatprep.subr.bf16.mxu1 %v4308_v2  ;;  %v4311_v5 = vld [vmem:[%s4479_s24 + $0x18] sm:$0xff]   ;;  %v2458_v6 = vld [vmem:[#allocation2] sm:$0xff]  ;;  %v2459_v7 = vld [vmem:[#allocation2 + $0x8] sm:$0xff]  ;;  %s2790_s27 = sadd.s32 (!%p3364_p2), 1, %s4345_s14  ;;  %s3369_s25 = sshll.u32 (!%p3364_p2), %s4341_s13, 8 }
 0x31e   : > { %3899 = vmatpush3.bf16.msra.mxu0 %v4308_v2  ;;  %4030 = vmatpush3.bf16.msra.mxu1 %v4308_v2  ;;  %v2474_v8 = vld [vmem:[#allocation2 + $0x80] sm:$0xff]  ;;  %v2490_v9 = vpack.c.bf16 %v2459_v7, %v2458_v6  ;;  %v2475_v10 = vld [vmem:[#allocation2 + $0x88] sm:$0xff]  ;;  %v4314_v14 = vld [vmem:[%s4479_s24 + $0x30] sm:$0xff]   ;;  %p2791_p3 = scmp.lt.s32.totalorder (!%p3364_p2), %s2790_s27, 0  ;;  %s2792_s12 = ssub.s32 (!%p3364_p2), 0, %s2790_s27 }
 0x31f   : > { %3900 = vmatprep.subr.bf16.mxu0 %v4309_v3  ;;  %4023 = vmatprep.subr.bf16.mxu1 %v4309_v3  ;;  %v2498_v11 = vpack.c.bf16 %v2475_v10, %v2474_v8  ;;  %v4312_v12 = vld [vmem:[%s4479_s24 + $0x20] sm:$0xff]   ;;  %v4313_v13 = vld [vmem:[%s4479_s24 + $0x28] sm:$0xff]   ;;  %v4315_v15 = vld [vmem:[%s4479_s24 + $0x38] sm:$0xff]   ;;  %s3365_s20 = smin.u32 (!%p3364_p2), %s2792_s12, %s2790_s27 }
 0x320   : > { %3914 = vmatprep.mubr.bf16.mxu0 %v2490_v9  ;;  %v2460_v16 = vld [vmem:[#allocation2 + $0x10] sm:$0xff]  ;;  %v2461_v17 = vld [vmem:[#allocation2 + $0x18] sm:$0xff]  ;;  %v2462_v20 = vld [vmem:[#allocation2 + $0x20] sm:$0xff]  ;;  %s2794_s21 = sand.u32 (!%p3364_p2), 1, %s3365_s20  }
 0x321   : > { %3930 = vmatprep.mubr.bf16.mxu1 %v2498_v11  ;;  %v2476_v18 = vld [vmem:[#allocation2 + $0x90] sm:$0xff]  ;;  %v2477_v19 = vld [vmem:[#allocation2 + $0x98] sm:$0xff]  ;;  %v2463_v21 = vld [vmem:[#allocation2 + $0x28] sm:$0xff]  ;;  %v2491_v24 = vpack.c.bf16 %v2461_v17, %v2460_v16  ;;  %s2795_s23 = ssub.s32 (!%p3364_p2), 0, %s2794_s21 }
 0x322   : > { %3901 = vmatpush3.bf16.msra.mxu0 %v4309_v3  ;;  %4031 = vmatpush3.bf16.msra.mxu1 %v4309_v3  ;;  %v2478_v22 = vld [vmem:[#allocation2 + $0xa0] sm:$0xff]  ;;  %v2479_v23 = vld [vmem:[#allocation2 + $0xa8] sm:$0xff]  ;;  %v2499_v25 = vpack.c.bf16 %v2477_v19, %v2476_v18  ;;  %v2492_v26 = vpack.c.bf16 %v2463_v21, %v2462_v20  ;;  %v2464_v28 = vld [vmem:[#allocation2 + $0x30] sm:$0xff] }
 0x323   : > { %3902 = vmatprep.subr.bf16.mxu0 %v4310_v4  ;;  %4024 = vmatprep.subr.bf16.mxu1 %v4310_v4  ;;  %v2500_v27 = vpack.c.bf16 %v2479_v23, %v2478_v22  ;;  %v2465_v29 = vld [vmem:[#allocation2 + $0x38] sm:$0xff]  ;;  %v2480_v30 = vld [vmem:[#allocation2 + $0xb0] sm:$0xff]  ;;  %v2466_v32 = vld [vmem:[#allocation2 + $0x40] sm:$0xff] }
 0x324   : > { %v2481_v31 = vld [vmem:[#allocation2 + $0xb8] sm:$0xff]  ;;  %v2467_v33 = vld [vmem:[#allocation2 + $0x48] sm:$0xff]  ;;  %v2482_v34 = vld [vmem:[#allocation2 + $0xc0] sm:$0xff]  ;;  %v2493_v36 = vpack.c.bf16 %v2465_v29, %v2464_v28 }
 0x325   : > { %v2483_v35 = vld [vmem:[#allocation2 + $0xc8] sm:$0xff]  ;;  %v2501_v37 = vpack.c.bf16 %v2481_v31, %v2480_v30  ;;  %v2494_v38 = vpack.c.bf16 %v2467_v33, %v2466_v32  ;;  %v2468_v40 = vld [vmem:[#allocation2 + $0x50] sm:$0xff]  ;;  %v2469_v41 = vld [vmem:[#allocation2 + $0x58] sm:$0xff] }
 0x326   : > { %3903 = vmatpush3.bf16.msra.mxu0 %v4310_v4  ;;  %4032 = vmatpush3.bf16.msra.mxu1 %v4310_v4  ;;  %v2502_v39 = vpack.c.bf16 %v2483_v35, %v2482_v34  ;;  %v2484_v42 = vld [vmem:[#allocation2 + $0xd0] sm:$0xff]  ;;  %v2485_v43 = vld [vmem:[#allocation2 + $0xd8] sm:$0xff]  ;;  %v2470_v44 = vld [vmem:[#allocation2 + $0x60] sm:$0xff]  ;;  %v2495_v48 = vpack.c.bf16 %v2469_v41, %v2468_v40 }
 0x327   : > { %3904 = vmatprep.subr.bf16.mxu0 %v4311_v5  ;;  %4025 = vmatprep.subr.bf16.mxu1 %v4311_v5  ;;  %v2471_v45 = vld [vmem:[#allocation2 + $0x68] sm:$0xff]  ;;  %v2486_v46 = vld [vmem:[#allocation2 + $0xe0] sm:$0xff]  ;;  %v2503_v49 = vpack.c.bf16 %v2485_v43, %v2484_v42  ;;  %v2472_v52 = vld [vmem:[#allocation2 + $0x70] sm:$0xff] }
 0x328   : > { %v2487_v47 = vld [vmem:[#allocation2 + $0xe8] sm:$0xff]  ;;  %v2496_v50 = vpack.c.bf16 %v2471_v45, %v2470_v44  ;;  %v2473_v53 = vld [vmem:[#allocation2 + $0x78] sm:$0xff]  ;;  %v2488_v54 = vld [vmem:[#allocation2 + $0xf0] sm:$0xff] }
 0x329   : > { %v2504_v51 = vpack.c.bf16 %v2487_v47, %v2486_v46  ;;  %v2489_v55 = vld [vmem:[#allocation2 + $0xf8] sm:$0xff]  ;;  %v2497_v56 = vpack.c.bf16 %v2473_v53, %v2472_v52  ;;  %v4761_v58 = vld [vmem:[%s4951_s30] ss:$0 sm:$0xff] }
 0x32a   : > { %3905 = vmatpush3.bf16.msra.mxu0 %v4311_v5  ;;  %4033 = vmatpush3.bf16.msra.mxu1 %v4311_v5  ;;  %v2505_v57 = vpack.c.bf16 %v2489_v55, %v2488_v54 }
 0x32b   : > { %3906 = vmatprep.subr.bf16.mxu0 %v4312_v12  ;;  %4026 = vmatprep.subr.bf16.mxu1 %v4312_v12 }
 0x32e   : > { %3907 = vmatpush3.bf16.msra.mxu0 %v4312_v12  ;;  %4034 = vmatpush3.bf16.msra.mxu1 %v4312_v12 }
 0x32f   : > { %3908 = vmatprep.subr.bf16.mxu0 %v4313_v13  ;;  %4027 = vmatprep.subr.bf16.mxu1 %v4313_v13 }
 0x332   : > { %3909 = vmatpush3.bf16.msra.mxu0 %v4313_v13  ;;  %4035 = vmatpush3.bf16.msra.mxu1 %v4313_v13 }
 0x333   : > { %3910 = vmatprep.subr.bf16.mxu0 %v4314_v14  ;;  %4028 = vmatprep.subr.bf16.mxu1 %v4314_v14 }
 0x336   : > { %3911 = vmatpush3.bf16.msra.mxu0 %v4314_v14  ;;  %4036 = vmatpush3.bf16.msra.mxu1 %v4314_v14 }
 0x337   : > { %3912 = vmatprep.subr.bf16.mxu0 %v4315_v15  ;;  %4029 = vmatprep.subr.bf16.mxu1 %v4315_v15 }
 0x33a   : > { %3913 = vmatpush3.bf16.msra.mxu0 %v4315_v15  ;;  %4037 = vmatpush3.bf16.msra.mxu1 %v4315_v15 }
 0x33d   : > { %3915 = vmatmul.mubr.bf16.vlgmr.msra.gmra.mrb[0].mxu0 %v2491_v24  ;;  %3931 = vmatmul.mubr.bf16.vlgmr.msra.gmra.mrb[0].mxu1 %v2499_v25 }
 0x33e   : > { %3918 = vmatprep.mubr.bf16.mxu0 %v2492_v26  ;;  %3934 = vmatprep.mubr.bf16.mxu1 %v2500_v27 }
 0x345   : > { %3919 = vmatmul.mubr.bf16.gmra.mrb[4].mxu0 %v2493_v36  ;;  %3935 = vmatmul.mubr.bf16.gmra.mrb[4].mxu1 %v2501_v37 }
 0x346   : > { %3922 = vmatprep.mubr.bf16.mxu0 %v2494_v38  ;;  %3938 = vmatprep.mubr.bf16.mxu1 %v2502_v39 }
 0x34d   : > { %3923 = vmatmul.mubr.bf16.gmra.mrb[8].mxu0 %v2495_v48  ;;  %3939 = vmatmul.mubr.bf16.gmra.mrb[8].mxu1 %v2503_v49 }
 0x34e   : > { %3926 = vmatprep.mubr.bf16.mxu0 %v2496_v50  ;;  %3942 = vmatprep.mubr.bf16.mxu1 %v2504_v51 }
 0x355   : > { %3927 = vmatmul.mubr.bf16.gmra.mrb[12].mxu0 %v2497_v56  ;;  %3943 = vmatmul.mubr.bf16.gmra.mrb[12].mxu1 %v2505_v57 }
 0x410   : > { %v3916_v59 = vpop.f32.mrb[0].mxu0  ;;  %v3932_v60 = vpop.f32.mrb[0].mxu1 }
 0x411   : > { %v2620_v61 = vadd.f32 %v3916_v59, %v4761_v58  ;;  %v2684_v62 = vadd.f32 %v3932_v60, %v4761_v58  ;;  %v2611_v63 = vpop.f32.mrb[1].mxu0  ;;  %v2675_v0 = vpop.f32.mrb[1].mxu1 }
 0x412   : > { %v2612_v1 = vadd.f32 %v4761_v58, %v2611_v63  ;;  %v2676_v2 = vadd.f32 %v4761_v58, %v2675_v0  ;;  %v3917_v3 = vpop.f32.mrb[2].mxu0  ;;  %v3933_v4 = vpop.f32.mrb[2].mxu1 }
 0x413   : > { %v2623_v5 = vadd.f32 %v3917_v3, %v4761_v58  ;;  %v2687_v6 = vadd.f32 %v3933_v4, %v4761_v58  ;;  %v2614_v7 = vpop.f32.mrb[3].mxu0  ;;  %v2678_v8 = vpop.f32.mrb[3].mxu1  ;;  %v2740_v11 = vmax.f32 %v2620_v61, 0.0  ;;  %v2756_v12 = vmax.f32 %v2684_v62, 0.0 }
 0x414   : > { %v2615_v9 = vadd.f32 %v4761_v58, %v2614_v7  ;;  %v2679_v10 = vadd.f32 %v4761_v58, %v2678_v8  ;;  %v2738_v15 = vmax.f32 %v2612_v1, 0.0  ;;  %v2754_v16 = vmax.f32 %v2676_v2, 0.0 }
 0x415   : > { %v2741_v13 = vmax.f32 %v2623_v5, 0.0  ;;  %v2757_v14 = vmax.f32 %v2687_v6, 0.0 }
 0x416   : > { %v2739_v17 = vmax.f32 %v2615_v9, 0.0  ;;  %v2755_v18 = vmax.f32 %v2679_v10, 0.0 }
 0x417   : > { %v4771_v19 = vpack.c.bf16 %v2741_v13, %v2740_v11  ;;  %v4773_v20 = vpack.c.bf16 %v2757_v14, %v2756_v12 }
 0x418   : > { %v4775_v21 = vpack.c.bf16 %v2739_v17, %v2738_v15  ;;  %v4777_v22 = vpack.c.bf16 %v2755_v18, %v2754_v16  ;;  %v3920_v23 = vpop.f32.mrb[4].mxu0  ;;  %v3936_v24 = vpop.f32.mrb[4].mxu1 }
 0x419   : > { %v2636_v25 = vadd.f32 %v3920_v23, %v4761_v58  ;;  %v2700_v26 = vadd.f32 %v3936_v24, %v4761_v58  ;;  %v2627_v27 = vpop.f32.mrb[5].mxu0  ;;  %v2691_v28 = vpop.f32.mrb[5].mxu1 }
 0x41a   : > { %v2628_v29 = vadd.f32 %v4761_v58, %v2627_v27  ;;  %v2692_v30 = vadd.f32 %v4761_v58, %v2691_v28  ;;  %v3921_v31 = vpop.f32.mrb[6].mxu0  ;;  %v3937_v32 = vpop.f32.mrb[6].mxu1 }
 0x41b   : > { %v2639_v33 = vadd.f32 %v3921_v31, %v4761_v58  ;;  %v2703_v34 = vadd.f32 %v3937_v32, %v4761_v58  ;;  %v2630_v35 = vpop.f32.mrb[7].mxu0  ;;  %v2694_v36 = vpop.f32.mrb[7].mxu1  ;;  %v2744_v39 = vmax.f32 %v2636_v25, 0.0  ;;  %v2760_v40 = vmax.f32 %v2700_v26, 0.0 }
 0x41c   : > { %v2631_v37 = vadd.f32 %v4761_v58, %v2630_v35  ;;  %v2695_v38 = vadd.f32 %v4761_v58, %v2694_v36  ;;  %v2742_v43 = vmax.f32 %v2628_v29, 0.0  ;;  %v2758_v44 = vmax.f32 %v2692_v30, 0.0 }
 0x41d   : > { %v2745_v41 = vmax.f32 %v2639_v33, 0.0  ;;  %v2761_v42 = vmax.f32 %v2703_v34, 0.0 }
 0x41e   : > { %v2743_v45 = vmax.f32 %v2631_v37, 0.0  ;;  %v2759_v46 = vmax.f32 %v2695_v38, 0.0 }
 0x41f   : > { %v4787_v47 = vpack.c.bf16 %v2745_v41, %v2744_v39  ;;  %v4789_v48 = vpack.c.bf16 %v2761_v42, %v2760_v40 }
 0x420   : > { %v4791_v49 = vpack.c.bf16 %v2743_v45, %v2742_v43  ;;  %v4793_v50 = vpack.c.bf16 %v2759_v46, %v2758_v44  ;;  %v3924_v51 = vpop.f32.mrb[8].mxu0  ;;  %v3940_v52 = vpop.f32.mrb[8].mxu1 }
 0x421   : > { %v2652_v53 = vadd.f32 %v3924_v51, %v4761_v58  ;;  %v2716_v54 = vadd.f32 %v3940_v52, %v4761_v58  ;;  %v2643_v55 = vpop.f32.mrb[9].mxu0  ;;  %v2707_v56 = vpop.f32.mrb[9].mxu1 }
 0x422   : > { %v2644_v57 = vadd.f32 %v4761_v58, %v2643_v55  ;;  %v2708_v59 = vadd.f32 %v4761_v58, %v2707_v56  ;;  %v3925_v60 = vpop.f32.mrb[10].mxu0  ;;  %v3941_v61 = vpop.f32.mrb[10].mxu1 }
 0x423   : > { %v2655_v62 = vadd.f32 %v3925_v60, %v4761_v58  ;;  %v2719_v63 = vadd.f32 %v3941_v61, %v4761_v58  ;;  %v2646_v0 = vpop.f32.mrb[11].mxu0  ;;  %v2710_v1 = vpop.f32.mrb[11].mxu1  ;;  %v2748_v4 = vmax.f32 %v2652_v53, 0.0  ;;  %v2764_v5 = vmax.f32 %v2716_v54, 0.0 }
 0x424   : > { %v2647_v2 = vadd.f32 %v4761_v58, %v2646_v0  ;;  %v2711_v3 = vadd.f32 %v4761_v58, %v2710_v1  ;;  %v2746_v8 = vmax.f32 %v2644_v57, 0.0  ;;  %v2762_v9 = vmax.f32 %v2708_v59, 0.0 }
 0x425   : > { %v2749_v6 = vmax.f32 %v2655_v62, 0.0  ;;  %v2765_v7 = vmax.f32 %v2719_v63, 0.0 }
 0x426   : > { %v2747_v10 = vmax.f32 %v2647_v2, 0.0  ;;  %v2763_v11 = vmax.f32 %v2711_v3, 0.0 }
 0x427   : > { %v4803_v12 = vpack.c.bf16 %v2749_v6, %v2748_v4  ;;  %v4805_v13 = vpack.c.bf16 %v2765_v7, %v2764_v5 }
 0x428   : > { %v4807_v14 = vpack.c.bf16 %v2747_v10, %v2746_v8  ;;  %v4809_v15 = vpack.c.bf16 %v2763_v11, %v2762_v9  ;;  %v3928_v16 = vpop.f32.mrb[12].mxu0  ;;  %v3944_v17 = vpop.f32.mrb[12].mxu1 }
 0x429   : > { %v2668_v18 = vadd.f32 %v3928_v16, %v4761_v58  ;;  %v2732_v23 = vadd.f32 %v3944_v17, %v4761_v58  ;;  %v2659_v24 = vpop.f32.mrb[13].mxu0  ;;  %v2723_v25 = vpop.f32.mrb[13].mxu1 }
 0x42a   : > { %v2660_v26 = vadd.f32 %v4761_v58, %v2659_v24  ;;  %v2724_v27 = vadd.f32 %v4761_v58, %v2723_v25  ;;  %v3929_v28 = vpop.f32.mrb[14].mxu0  ;;  %v3945_v29 = vpop.f32.mrb[14].mxu1  ;;  %2789 = sbr.rel (%p3364_p2) target bundleno = 1090 (0x442), region = 84 }
 0x42b   : > { %v2671_v30 = vadd.f32 %v3929_v28, %v4761_v58  ;;  %v2735_v31 = vadd.f32 %v3945_v29, %v4761_v58  ;;  %v2662_v32 = vpop.f32.mrb[15].mxu0  ;;  %v2726_v33 = vpop.f32.mrb[15].mxu1  ;;  %v2752_v36 = vmax.f32 %v2668_v18, 0.0  ;;  %v2768_v37 = vmax.f32 %v2732_v23, 0.0 }
 0x42c   : > { %v2663_v34 = vadd.f32 %v4761_v58, %v2662_v32  ;;  %v2727_v35 = vadd.f32 %v4761_v58, %v2726_v33  ;;  %v2750_v40 = vmax.f32 %v2660_v26, 0.0  ;;  %v2766_v41 = vmax.f32 %v2724_v27, 0.0 }
 0x42d   : > { %v2753_v38 = vmax.f32 %v2671_v30, 0.0  ;;  %v2769_v39 = vmax.f32 %v2735_v31, 0.0 }
 0x42e   : > { %v2751_v42 = vmax.f32 %v2663_v34, 0.0  ;;  %v2767_v43 = vmax.f32 %v2727_v35, 0.0 }
 0x42f   : > { %v2777_v44 = vpack.c.bf16 %v2753_v38, %v2752_v36  ;;  %v2785_v45 = vpack.c.bf16 %v2769_v39, %v2768_v37 }
 0x430   : > { %v2776_v46 = vpack.c.bf16 %v2751_v42, %v2750_v40  ;;  %v2784_v51 = vpack.c.bf16 %v2767_v43, %v2766_v41 }
 0x431   : > { %s4971_s23 = smov (!%p2791_p3, %s2795_s23), %s2794_s21 }
 0x432   : > { %p3367_p4 = scmp.lt.s32.totalorder %s4971_s23, 0  ;;  %s2801_s0 = sadd.s32 2, %s4971_s23 }
 0x434   : > { %s4973_s0 = smov (!%p3367_p4, %s2801_s0), %s4971_s23 }
 0x435   : > { %s3368_s22 = sshll.u32 %s4973_s0, 9 }
 0x436   : > { %s2805_s28 = sadd.s32 %s3369_s25, %s3368_s22 }
 0x437   : > { %s2806_s29 = sshra.s32 %s2805_s28, 4 }
 0x438   : > { %s3370_s26 = sshll.u32 %s2806_s29, 3 }
 0x439   : > { %s2809_s24 = scalar_lea.vmem [#allocation4], %s3370_s26 }
 0x43a   : > { %2810 = vst [vmem:[%s2809_s24] sm:$0xff] %v4775_v21  ;;  %2811 = vst [vmem:[%s2809_s24 + $0x8] sm:$0xff] %v4771_v19 }
 0x43b   : > { %2812 = vst [vmem:[%s2809_s24 + $0x10] sm:$0xff] %v4791_v49  ;;  %2813 = vst [vmem:[%s2809_s24 + $0x18] sm:$0xff] %v4787_v47 }
 0x43c   : > { %2814 = vst [vmem:[%s2809_s24 + $0x20] sm:$0xff] %v4807_v14  ;;  %2815 = vst [vmem:[%s2809_s24 + $0x28] sm:$0xff] %v4803_v12 }
 0x43d   : > { %2816 = vst [vmem:[%s2809_s24 + $0x30] sm:$0xff] %v2776_v46  ;;  %2817 = vst [vmem:[%s2809_s24 + $0x38] sm:$0xff] %v2777_v44 }
 0x43e   : > { %2818 = vst [vmem:[%s2809_s24 + $0x40] sm:$0xff] %v4777_v22  ;;  %2819 = vst [vmem:[%s2809_s24 + $0x48] sm:$0xff] %v4773_v20 }
 0x43f   : > { %2820 = vst [vmem:[%s2809_s24 + $0x50] sm:$0xff] %v4793_v50  ;;  %2821 = vst [vmem:[%s2809_s24 + $0x58] sm:$0xff] %v4789_v48 }
 0x440   : > { %2822 = vst [vmem:[%s2809_s24 + $0x60] sm:$0xff] %v4809_v15  ;;  %2823 = vst [vmem:[%s2809_s24 + $0x68] sm:$0xff] %v4805_v13 }
 0x441   : > { %2824 = vst [vmem:[%s2809_s24 + $0x70] sm:$0xff] %v2784_v51  ;;  %2825 = vst [vmem:[%s2809_s24 + $0x78] sm:$0xff] %v2785_v45 }
 0x442 PF: > { %p3371_p6 = scmp.ne.s32.totalorder %s4345_s14, 2 }
 0x443   : > { %3854 = vmatprep.subr.bf16.mxu0 (!%p3371_p6), %v4777_v22  ;;  %v2831_v58 = vld [vmem:[%s4473_s11] sm:$0xff] (!%p3371_p6) }
 0x444   : > { %2829 = sbr.rel (%p3371_p6) target bundleno = 1341 (0x53d), region = 88  ;;  %3855 = vmatpush3.bf16.msra.mxu0 (!%p3371_p6), %v4775_v21  ;;  %v3373_v52 = vcombine.high (!%p3371_p6), %v2831_v58, %v2831_v58  ;;  %v2830_v21 = vld [vmem:[#allocation3] sm:$0xff] (!%p3371_p6) }
 0x445   : > { %3856 = vmatprep.subr.bf16.mxu0 (!%p3371_p6), %v4773_v20 }
 0x446   : > { %2871 = vmatprep.mubr.bf16.mxu0 (!%p3371_p6), %v3373_v52 }
 0x448   : > { %3857 = vmatpush3.bf16.msra.mxu0 (!%p3371_p6), %v4771_v19  ;;  %v3372_v19 = vcombine.low (!%p3371_p6), %v2831_v58, %v2831_v58 }
 0x449   : > { %3858 = vmatprep.subr.bf16.mxu0 (!%p3371_p6), %v4793_v50 }
 0x44c   : > { %3859 = vmatpush3.bf16.msra.mxu0 %v4791_v49 }
 0x44d   : > { %3860 = vmatprep.subr.bf16.mxu0 %v4789_v48 }
 0x450   : > { %3861 = vmatpush3.bf16.msra.mxu0 %v4787_v47 }
 0x451   : > { %3862 = vmatprep.subr.bf16.mxu0 %v4809_v15 }
 0x454   : > { %3863 = vmatpush3.bf16.msra.mxu0 %v4807_v14 }
 0x455   : > { %3864 = vmatprep.subr.bf16.mxu0 %v4805_v13 }
 0x458   : > { %3865 = vmatpush3.bf16.msra.mxu0 %v4803_v12 }
 0x459   : > { %3866 = vmatprep.subr.bf16.mxu0 %v2784_v51 }
 0x45c   : > { %3867 = vmatpush3.bf16.msra.mxu0 %v2776_v46 }
 0x45d   : > { %3868 = vmatprep.subr.bf16.mxu0 %v2785_v45 }
 0x460   : > { %3869 = vmatpush3.bf16.msra.mxu0 %v2777_v44 }
 0x463   : > { %2872 = vmatmul.mubr.bf16.vlgmr.msra.gmra.mrb[0].mxu0 %v3372_v19 }
 0x536   : > { %v3870_v20 = vpop.f32.mrb[0].mxu0 }
 0x537   : > { %v3871_v22 = vpop.f32.mrb[1].mxu0 }
 0x538   : > { %v3872_v48 = vadd.f32 %v3871_v22, %v3870_v20  ;;  %v3873_v49 = vpop.f32.mrb[2].mxu0 }
 0x539   : > { %v3874_v47 = vpop.f32.mrb[3].mxu0 }
 0x53a   : > { %v2879_v50 = vadd.f32 %v3872_v48, %v2830_v21 }
 0x53c   : > { %2880 = vst [vmem:[#allocation3] sm:$0xff] %v2879_v50 }
 0x53d PF: > { %p2882_p7 = scmp.eq.s32.totalorder %s4341_s13, 1 }
 0x53f   : > { %p2883_p8 = pnand %p2882_p7, %p473_p5 }
 0x540   : > { %v2890_v53 = vld [vmem:[%s4941_s3] sm:$0xff] (!%p2883_p8)  ;;  %v2898_v55 = vld [vmem:[%s4944_s6 + $0x8] sm:$0xff] (!%p2883_p8)  ;;  %v4361_v56 = vmov (!%p2883_p8), 0   ;;  %v4362_v57 = vmov (!%p2883_p8), 0.0|0.0   ;;  %v2899_v60 = vld [vmem:[%s4944_s6 + $0x10] sm:$0xff] (!%p2883_p8)  ;;  %vm4363_vm0 = vmmov (!%p2883_p8), 0  }
 0x541   : > { %2888 = sbr.rel (%p2883_p8) target bundleno = 1907 (0x773), region = 92  ;;  %v2897_v54 = vld [vmem:[%s4944_s6] sm:$0xff] (!%p2883_p8)  ;;  %4318 = vset.pattern.permute.xlu0 (!%p2883_p8), %v4361_v56  ;;  %3992 = vmatprep.subr.bf16.mxu0 (!%p2883_p8), %v4362_v57  ;;  %v2900_v61 = vld [vmem:[%s4944_s6 + $0x18] sm:$0xff] (!%p2883_p8)  ;;  %v4364_v63 = vmov (!%p2883_p8), 0.0   ;;  %v2902_v1 = vld [vmem:[%s4944_s6 + $0x28] sm:$0xff] (!%p2883_p8)  ;;  %vm3002_vm1 = vcmask (!%p2883_p8), 261120  }
 0x542   : > { %v3993_v59 = vpack.c.bf16 (!%p2883_p8), %v2898_v55, %v2897_v54  ;;  %2893 = vperm.xlu0 (!%p2883_p8), %4318, %v2890_v53   ;;  %4016 = vmatprep.subr.bf16.mxu1 (!%p2883_p8), %v4362_v57  ;;  %v3996_v62 = vpack.c.bf16 (!%p2883_p8), %v2900_v61, %v2899_v60  ;;  %v2901_v0 = vld [vmem:[%s4944_s6 + $0x20] sm:$0xff] (!%p2883_p8)  ;;  %v2992_v3 = vld [vmem:[%s4946_s8 + $0x8] sm:$0xff] (!%p2883_p8)  ;;  %v2903_v6 = vld [vmem:[%s4944_s6 + $0x30] sm:$0xff] (!%p2883_p8)  ;;  %vm3076_vm2 = vcmask (!%p2883_p8), 64512  }
 0x543   : > { %3978 = vmatprep.mubr.msk.f32.mxu0 (!%p2883_p8), %vm4363_vm0, %v4364_v63  ;;  %3989 = vmatprep.mubr.msk.f32.mxu1 (!%p2883_p8), %vm4363_vm0, %v4364_v63  ;;  %v2991_v2 = vld [vmem:[%s4946_s8] sm:$0xff] (!%p2883_p8)  ;;  %v3999_v4 = vpack.c.bf16 (!%p2883_p8), %v2902_v1, %v2901_v0  ;;  %v2904_v7 = vld [vmem:[%s4944_s6 + $0x38] sm:$0xff] (!%p2883_p8)  ;;  %v2906_v10 = vld [vmem:[%s4944_s6 + $0x48] sm:$0xff] (!%p2883_p8) }
 0x544   : > { %3994 = vmatpush3.bf16.msra.mxu0 (!%p2883_p8), %v3993_v59  ;;  %v4017_v5 = vpack.c.bf16 (!%p2883_p8), %v2992_v3, %v2991_v2  ;;  %v4002_v8 = vpack.c.bf16 (!%p2883_p8), %v2904_v7, %v2903_v6  ;;  %v2905_v9 = vld [vmem:[%s4944_s6 + $0x40] sm:$0xff] (!%p2883_p8)  ;;  %v2907_v12 = vld [vmem:[%s4944_s6 + $0x50] sm:$0xff] (!%p2883_p8)  ;;  %v2908_v13 = vld [vmem:[%s4944_s6 + $0x58] sm:$0xff] (!%p2883_p8) }
 0x545   : > { %3995 = vmatprep.subr.bf16.mxu0 (!%p2883_p8), %v4362_v57  ;;  %v4005_v11 = vpack.c.bf16 (!%p2883_p8), %v2906_v10, %v2905_v9  ;;  %v4008_v14 = vpack.c.bf16 (!%p2883_p8), %v2908_v13, %v2907_v12  ;;  %v2909_v15 = vld [vmem:[%s4944_s6 + $0x60] sm:$0xff] (!%p2883_p8)  ;;  %v2910_v16 = vld [vmem:[%s4944_s6 + $0x68] sm:$0xff] (!%p2883_p8)  ;;  %v2911_v18 = vld [vmem:[%s4944_s6 + $0x70] sm:$0xff] (!%p2883_p8) }
 0x546   : > { %4018 = vmatpush3.bf16.msra.mxu1 (!%p2883_p8), %v4017_v5  ;;  %v4011_v17 = vpack.c.bf16 (!%p2883_p8), %v2910_v16, %v2909_v15  ;;  %v2912_v23 = vld [vmem:[%s4944_s6 + $0x78] sm:$0xff] (!%p2883_p8)  ;;  %v2889_v25 = vld [vmem:[#allocation3] sm:$0xff] (!%p2883_p8)  ;;  %v2993_v28 = vld [vmem:[%s4946_s8 + $0x10] sm:$0xff] (!%p2883_p8) }
 0x547   : > { %4019 = vmatprep.subr.bf16.mxu1 (!%p2883_p8), %v4362_v57  ;;  %v4014_v24 = vpack.c.bf16 (!%p2883_p8), %v2912_v23, %v2911_v18  ;;  %v2994_v29 = vld [vmem:[%s4946_s8 + $0x18] sm:$0xff] (!%p2883_p8)  ;;  %v3375_v31 = vld [vmem:[%s4945_s7] ss:$0 sm:$0xff] (!%p2883_p8) }
 0x548   : > { %3997 = vmatpush3.bf16.msra.mxu0 %v3996_v62  ;;  %v4020_v30 = vpack.c.bf16 %v2994_v29, %v2993_v28  ;;  %v3376_v36 = vld [vmem:[%s4947_s9] ss:$0 sm:$0xff] }
 0x549   : > { %3998 = vmatprep.subr.bf16.mxu0 %v4362_v57 }
 0x54a   : > { %4021 = vmatpush3.bf16.msra.mxu1 %v4020_v30 }
 0x54c   : > { %4000 = vmatpush3.bf16.msra.mxu0 %v3999_v4 }
 0x54d   : > { %4001 = vmatprep.subr.bf16.mxu0 %v4362_v57 }
 0x550   : > { %4003 = vmatpush3.bf16.msra.mxu0 %v4002_v8 }
 0x551   : > { %4004 = vmatprep.subr.bf16.mxu0 %v4362_v57 }
 0x554   : > { %4006 = vmatpush3.bf16.msra.mxu0 %v4005_v11 }
 0x555   : > { %4007 = vmatprep.subr.bf16.mxu0 %v4362_v57 }
 0x558   : > { %4009 = vmatpush3.bf16.msra.mxu0 %v4008_v14 }
 0x559   : > { %4010 = vmatprep.subr.bf16.mxu0 %v4362_v57 }
 0x55c   : > { %4012 = vmatpush3.bf16.msra.mxu0 %v4011_v17 }
 0x55d   : > { %4013 = vmatprep.subr.bf16.mxu0 %v4362_v57 }
 0x560   : > { %4015 = vmatpush3.bf16.msra.mxu0 %v4014_v24 }
 0x5c1   : > { %v2894_v26 = vpop.permute.xlu0 %2893 }
 0x5c2   : > { %v2896_v27 = vmul.f32 %v2894_v26, %v2889_v25 }
 0x5c4   : > { %3979 = vmatmul.mubr.f32.vlgmr.msra.gmra.mrb[0].mxu0 %v2896_v27 }
 0x697   : > { %v2986_v32 = vpop.f32.mrb[0].mxu0 }
 0x698   : > { %v2987_v33 = vadd.f32 %v3375_v31, %v2986_v32  ;;  %v3980_v34 = vpop.f32.mrb[1].mxu0 }
 0x69a   : > { %v2990_v35 = vmax.f32 %v2987_v33, 0.0 }
 0x69c   : > { %3990 = vmatmul.mubr.msk.f32.vlgmr.msra.gmra.mrb[0].mxu1 %vm3002_vm1, %v2990_v35 }
 0x76f   : > { %v3072_v37 = vpop.f32.mrb[0].mxu1 }
 0x770   : > { %v3073_v38 = vadd.f32 %v3376_v36, %v3072_v37  ;;  %v3991_v39 = vpop.f32.mrb[1].mxu1 }
 0x772   : > { %3077 = vst.msk [vmem:[%s4948_s10] sm:$0xff] %vm3076_vm2, %v3073_v38 }
 0x773 PF: > { %s20_s17 = sadd.s32 1, %s4357_s17   ;;  %s4952_s13 = smov %s4349_s15 }
 0x774   : > { %p17_p5 = scmp.ge.s32.totalorder %s20_s17, 8   ;;  %s4953_s14 = smov %s4353_s16 }
 0x775   : > { %s4954_s15 = smov %s4957_s18  ;;  %s4955_s16 = smov %s4961_s19 }
 0x776   :  { %19 = sbr.rel (!%p17_p5) target bundleno = 3 (0x3), region = 132 }

</bundles_post_ra>
